<compile_context>
chip_gen: v7x
topology: tpu7x:2x2x1
jax: 0.10.0
libtpu: 0.0.40
codegen_flags: <defaults>
</compile_context>

<pallas_src>
import math
from functools import partial

import jax
import jax.numpy as jnp
from jax import lax
from jax.experimental import pallas as pl
from jax.experimental.pallas import tpu as pltpu


def _round_up(x, m):
    return ((x + m - 1) // m) * m


def _pick_tb(B, align):
    """Largest batch tile (multiple of `align`, <= 8*align) keeping >=2 grid steps."""
    for mult in (8, 4, 2, 1):
        tb = mult * align
        if B >= 2 * tb:
            return tb
    return align


# ------------------------------ fused kernel --------------------------------

def _make_kernel(M, S, PP, TB):
    """S = N*N pooled pixels/channel, PP = pool*pool window size, TB = images/step."""
    GS = TB * S  # lanes per pooling-window-offset group (multiple of 128)

    def kernel(p_ref, wc_ref, cb_ref, fcwT_ref, eselT_ref, fcb_ref, o_ref):
        # p_ref    : (K_pad, PP*GS)  patches^T, lanes ordered (pi, pj, b, n1, n2)
        # wc_ref   : (M, K_pad)      conv weight (zero-padded rows)
        # cb_ref   : (M, 1)          conv bias
        # fcwT_ref : (M, 10, GS)     fc weight per conv channel, tiled per image
        # eselT_ref: (GS, TB)        0/1 block-diagonal selector (segment sum)
        # fcb_ref  : (10, 1)         fc bias
        # o_ref    : (10, TB)        logits^T for this batch tile

        # Conv as a single lane-dense MXU matmul, f32 accumulate.
        acc = jnp.dot(wc_ref[...], p_ref[...],
                      preferred_element_type=jnp.float32)          # (M, PP*GS)

        # Max-pool: pairwise VPU max over the PP window-offset groups; every
        # slice is a 128-lane-aligned static window of width GS.
        pooled = acc[:, 0:GS]
        for w in range(1, PP):
            pooled = jnp.maximum(pooled, acc[:, w * GS:(w + 1) * GS])

        # Per-channel bias + ReLU commute exactly with max -> apply post-pool.
        pooled = jnp.maximum(pooled + cb_ref[...], 0.0)            # (M, GS)

        # FC epilogue (no per-image slices / concats / reshapes):
        #   vt[o, b*S+s] = sum_m fc_w[o, m*S+s] * pooled[m, b*S+s]
        #   logits^T     = vt @ eselT   (sums each image's S lanes)
        vt = fcwT_ref[0] * pooled[0:1, :]
        for m in range(1, M):
            vt = vt + fcwT_ref[m] * pooled[m:m + 1, :]             # (10, GS)

        o_ref[...] = (jnp.dot(vt, eselT_ref[...],
                              preferred_element_type=jnp.float32)
                      + fcb_ref[...])                              # (10, TB)

    return kernel


# ------------------------------ JAX wrapper ----------------------------------

def _im2col_pool_order(x, p, N, pool, TB):
    """x: (B_pad, C, H, W) -> (G, K, TB*R) patches^T.

    Lane order within a batch tile is (pi, pj, b_in_tile, n1, n2) so the
    in-kernel maxpool is a pairwise max over contiguous 128-lane-aligned
    slices and the FC sees PyTorch's view(-1, M*N*N) feature order.
    """
    Bp, C, H, W = x.shape
    OH, OW = H - p + 1, W - p + 1
    G = Bp // TB
    cols = [x[:, :, di:di + OH, dj:dj + OW] for di in range(p) for dj in range(p)]
    pat = jnp.stack(cols, axis=2)                          # (Bp, C, p*p, OH, OW)
    pat = pat.reshape(G, TB, C, p * p, N, pool, N, pool)   # (g,b,c,dd,n1,pi,n2,pj)
    pat = pat.transpose(0, 2, 3, 5, 7, 1, 4, 6)            # (g,c,dd,pi,pj,b,n1,n2)
    return pat.reshape(G, C * p * p, TB * OH * OW)


@partial(jax.jit, static_argnums=(2, 3, 4, 5))
def netc_forward(x, params, M, p, N, mxu_dtype=jnp.bfloat16):
    """x: (B, 3, 28, 28) float32 NCHW.  Returns (B, 10) float32 logits."""
    conv_w, conv_b, fc_w, fc_b = params
    B, C, H, W = x.shape
    OH, OW = H - p + 1, W - p + 1
    pool = OH // N
    assert OH == N * pool and OW == N * pool, "spatial dims must tile exactly"
    S = N * N
    PP = pool * pool
    K = C * p * p
    R = OH * OW

    K_pad = _round_up(K, 16)               # sublane-tile aligned (bf16 & f32)

    tb_align = 128 // math.gcd(S, 128)     # TB*S must be a multiple of 128
    TB = _pick_tb(B, tb_align)
    B_pad = _round_up(B, TB)
    G = B_pad // TB
    GS = TB * S

    if B_pad != B:
        x = jnp.pad(x, ((0, B_pad - B), (0, 0), (0, 0), (0, 0)))

    # --- glue: im2col directly into the pooling-friendly lane order ---
    pat = _im2col_pool_order(x, p, N, pool, TB)                    # (G, K, TB*R)
    pat = jnp.pad(pat, ((0, 0), (0, K_pad - K), (0, 0))).astype(mxu_dtype)

    # --- trace-time weight prep ---
    wc = jnp.pad(conv_w.reshape(M, K).astype(jnp.float32),
                 ((0, 0), (0, K_pad - K))).astype(mxu_dtype)       # (M, K_pad)
    cb = conv_b.reshape(M, 1).astype(jnp.float32)                  # (M, 1)
    # FC weight per conv channel, tiled along the (b, s) lane axis: (M, 10, GS)
    fcw3 = fc_w.reshape(10, M, S).transpose(1, 0, 2).astype(jnp.float32)
    fcwT = jnp.broadcast_to(fcw3[:, :, None, :], (M, 10, TB, S)).reshape(M, 10, GS)
    # Block-diagonal 0/1 selector: sums each image's S pooled lanes.
    eselT = jnp.repeat(jnp.eye(TB, dtype=jnp.float32), S, axis=0)  # (GS, TB)
    fcb2 = fc_b.reshape(10, 1).astype(jnp.float32)

    kernel = _make_kernel(M, S, PP, TB)

    itemsize = jnp.dtype(mxu_dtype).itemsize
    cost = pl.CostEstimate(
        flops=2 * M * K_pad * PP * GS * G + 2 * (M + TB) * 10 * GS * G,
        transcendentals=0,
        bytes_accessed=int(pat.size * itemsize + wc.size * itemsize
                           + fcwT.size * 4 + eselT.size * 4 + G * 10 * TB * 4),
    )

    out = pl.pallas_call(
        kernel,
        out_shape=jax.ShapeDtypeStruct((G, 10, TB), jnp.float32),
        grid_spec=pltpu.PrefetchScalarGridSpec(
            num_scalar_prefetch=0,
            grid=(G,),
            in_specs=[
                pl.BlockSpec((None, K_pad, TB * R), lambda g: (g, 0, 0)),
                pl.BlockSpec((M, K_pad), lambda g: (0, 0)),
                pl.BlockSpec((M, 1), lambda g: (0, 0)),
                pl.BlockSpec((M, 10, GS), lambda g: (0, 0, 0)),
                pl.BlockSpec((GS, TB), lambda g: (0, 0)),
                pl.BlockSpec((10, 1), lambda g: (0, 0)),
            ],
            out_specs=pl.BlockSpec((None, 10, TB), lambda g: (g, 0, 0)),
        ),
        compiler_params=pltpu.CompilerParams(
            dimension_semantics=("parallel",),
            allow_input_fusion=[True, False, False, False, False, False],
        ),
        cost_estimate=cost,
    )(pat, wc, cb, fcwT, eselT, fcb2)

    # (G, 10, TB) -> (B, 10)
    out = out.transpose(0, 2, 1).reshape(B_pad, 10)
    return out[:B]


# ------------------------------ reference ------------------------------------

def netc_reference(x, params, M, p, N):
    """Pure-JAX reference reproducing the PyTorch forward."""
    conv_w, conv_b, fc_w, fc_b = params
    OH = x.shape[2] - p + 1
    pool = OH // N
    F = M * N * N
    y = lax.conv_general_dilated(
        x, conv_w, window_strides=(1, 1), padding="VALID",
        dimension_numbers=("NCHW", "OIHW", "NCHW"))
    y = jnp.maximum(y + conv_b.reshape(1, M, 1, 1), 0.0)
    y = lax.reduce_window(
        y, -jnp.inf, lax.max,
        window_dimensions=(1, 1, pool, pool),
        window_strides=(1, 1, pool, pool),
        padding="VALID")
    y = y.reshape(-1, F)
    return y @ fc_w.T + fc_b


# --------------------------------- main ---------------------------------------

if __name__ == "__main__":
    # Module hyperparameters (28x28 input is implied by pool_size = (29-p)/N).
    M, p, N = 4, 5, 4          # conv out channels, kernel size, pooled spatial
    B = 2

    key = jax.random.PRNGKey(0)
    kx, kw1, kb1, kw2, kb2 = jax.random.split(key, 5)

    x = jax.random.normal(kx, (B, 3, 28, 28), dtype=jnp.float32)

    conv_w = 0.1 * jax.random.normal(kw1, (M, 3, p, p), dtype=jnp.float32)
    conv_b = 0.1 * jax.random.normal(kb1, (M,), dtype=jnp.float32)
    F = M * N * N
    fc_w = 0.1 * jax.random.normal(kw2, (10, F), dtype=jnp.float32)
    fc_b = 0.1 * jax.random.normal(kb2, (10,), dtype=jnp.float32)
    params = (conv_w, conv_b, fc_w, fc_b)

    ref = jax.block_until_ready(netc_reference(x, params, M, p, N))

    # Exact-parity path (f32 MXU inputs).
    out_f32 = jax.block_until_ready(
        netc_forward(x, params, M, p, N, jnp.float32))
    assert out_f32.shape == (B, 10)
    assert jnp.allclose(out_f32, ref, atol=1e-4, rtol=1e-4), (
        f"f32 mismatch: max abs err {jnp.max(jnp.abs(out_f32 - ref))}")

    # Default fast path (bf16 patches/weights, f32 accumulate + f32 epilogue).
    out_bf16 = jax.block_until_ready(
        netc_forward(x, params, M, p, N, jnp.bfloat16))
    assert out_bf16.shape == (B, 10)
    assert jnp.allclose(out_bf16, ref, atol=2e-2, rtol=2e-2), (
        f"bf16 mismatch: max abs err {jnp.max(jnp.abs(out_bf16 - ref))}")

    print("KERNEL_OK")
</pallas_src>

<mosaic_0001>
module attributes {stable_mosaic.version = 11 : i64} {
  func.func @kernel(%arg0: i32, %arg1: memref<1x80x4608xf32, #tpu.memory_space<vmem>>, %arg2: memref<4x80xf32, #tpu.memory_space<vmem>>, %arg3: memref<4x1xf32, #tpu.memory_space<vmem>>, %arg4: memref<4x10x128xf32, #tpu.memory_space<vmem>>, %arg5: memref<128x8xf32, #tpu.memory_space<vmem>>, %arg6: memref<10x1xf32, #tpu.memory_space<vmem>>, %arg7: memref<1x10x8xf32, #tpu.memory_space<vmem>>) attributes {dimension_semantics = [#tpu.dimension_semantics<parallel>], iteration_bounds = array<i64: 1>, scalar_prefetch = 0 : i64, scratch_operands = 0 : i64, tpu.core_type = #tpu.core_type<tc>, window_params = [{transform_indices = @transform_0, window_bounds = array<i64: 1, 80, 4608>}, {pipeline_mode = #tpu.pipeline_mode<synchronous>, transform_indices = @transform_1, window_bounds = array<i64: 4, 80>}, {pipeline_mode = #tpu.pipeline_mode<synchronous>, transform_indices = @transform_2, window_bounds = array<i64: 4, 1>}, {pipeline_mode = #tpu.pipeline_mode<synchronous>, transform_indices = @transform_3, window_bounds = array<i64: 4, 10, 128>}, {pipeline_mode = #tpu.pipeline_mode<synchronous>, transform_indices = @transform_4, window_bounds = array<i64: 128, 8>}, {pipeline_mode = #tpu.pipeline_mode<synchronous>, transform_indices = @transform_5, window_bounds = array<i64: 10, 1>}, {transform_indices = @transform_6, window_bounds = array<i64: 1, 10, 8>}]} {
    %c0 = arith.constant 0 : index
    %c0_0 = arith.constant 0 : index
    %0 = vector.load %arg2[%c0, %c0_0] : memref<4x80xf32, #tpu.memory_space<vmem>>, vector<4x80xf32>
    %c0_1 = arith.constant 0 : index
    %c0_2 = arith.constant 0 : index
    %c0_3 = arith.constant 0 : index
    %1 = vector.load %arg1[%c0_1, %c0_2, %c0_3] : memref<1x80x4608xf32, #tpu.memory_space<vmem>>, vector<1x80x4608xf32>
    %2 = vector.shape_cast %1 : vector<1x80x4608xf32> to vector<80x4608xf32>
    %cst = arith.constant dense<0.000000e+00> : vector<4x4608xf32>
    %3 = tpu.matmul %0, %2, %cst {dimension_numbers = #tpu.dot_dimension_numbers<[1], [0], [0], [1], [0, 0, 1, 1], [], []>} : vector<4x80xf32>, vector<80x4608xf32>, vector<4x4608xf32> -> vector<4x4608xf32>
    %4 = vector.extract_strided_slice %3 {offsets = [0, 0], sizes = [4, 128], strides = [1, 1]} : vector<4x4608xf32> to vector<4x128xf32>
    %5 = vector.extract_strided_slice %3 {offsets = [0, 128], sizes = [4, 128], strides = [1, 1]} : vector<4x4608xf32> to vector<4x128xf32>
    %6 = arith.maximumf %4, %5 : vector<4x128xf32>
    %7 = vector.extract_strided_slice %3 {offsets = [0, 256], sizes = [4, 128], strides = [1, 1]} : vector<4x4608xf32> to vector<4x128xf32>
    %8 = arith.maximumf %6, %7 : vector<4x128xf32>
    %9 = vector.extract_strided_slice %3 {offsets = [0, 384], sizes = [4, 128], strides = [1, 1]} : vector<4x4608xf32> to vector<4x128xf32>
    %10 = arith.maximumf %8, %9 : vector<4x128xf32>
    %11 = vector.extract_strided_slice %3 {offsets = [0, 512], sizes = [4, 128], strides = [1, 1]} : vector<4x4608xf32> to vector<4x128xf32>
    %12 = arith.maximumf %10, %11 : vector<4x128xf32>
    %13 = vector.extract_strided_slice %3 {offsets = [0, 640], sizes = [4, 128], strides = [1, 1]} : vector<4x4608xf32> to vector<4x128xf32>
    %14 = arith.maximumf %12, %13 : vector<4x128xf32>
    %15 = vector.extract_strided_slice %3 {offsets = [0, 768], sizes = [4, 128], strides = [1, 1]} : vector<4x4608xf32> to vector<4x128xf32>
    %16 = arith.maximumf %14, %15 : vector<4x128xf32>
    %17 = vector.extract_strided_slice %3 {offsets = [0, 896], sizes = [4, 128], strides = [1, 1]} : vector<4x4608xf32> to vector<4x128xf32>
    %18 = arith.maximumf %16, %17 : vector<4x128xf32>
    %19 = vector.extract_strided_slice %3 {offsets = [0, 1024], sizes = [4, 128], strides = [1, 1]} : vector<4x4608xf32> to vector<4x128xf32>
    %20 = arith.maximumf %18, %19 : vector<4x128xf32>
    %21 = vector.extract_strided_slice %3 {offsets = [0, 1152], sizes = [4, 128], strides = [1, 1]} : vector<4x4608xf32> to vector<4x128xf32>
    %22 = arith.maximumf %20, %21 : vector<4x128xf32>
    %23 = vector.extract_strided_slice %3 {offsets = [0, 1280], sizes = [4, 128], strides = [1, 1]} : vector<4x4608xf32> to vector<4x128xf32>
    %24 = arith.maximumf %22, %23 : vector<4x128xf32>
    %25 = vector.extract_strided_slice %3 {offsets = [0, 1408], sizes = [4, 128], strides = [1, 1]} : vector<4x4608xf32> to vector<4x128xf32>
    %26 = arith.maximumf %24, %25 : vector<4x128xf32>
    %27 = vector.extract_strided_slice %3 {offsets = [0, 1536], sizes = [4, 128], strides = [1, 1]} : vector<4x4608xf32> to vector<4x128xf32>
    %28 = arith.maximumf %26, %27 : vector<4x128xf32>
    %29 = vector.extract_strided_slice %3 {offsets = [0, 1664], sizes = [4, 128], strides = [1, 1]} : vector<4x4608xf32> to vector<4x128xf32>
    %30 = arith.maximumf %28, %29 : vector<4x128xf32>
    %31 = vector.extract_strided_slice %3 {offsets = [0, 1792], sizes = [4, 128], strides = [1, 1]} : vector<4x4608xf32> to vector<4x128xf32>
    %32 = arith.maximumf %30, %31 : vector<4x128xf32>
    %33 = vector.extract_strided_slice %3 {offsets = [0, 1920], sizes = [4, 128], strides = [1, 1]} : vector<4x4608xf32> to vector<4x128xf32>
    %34 = arith.maximumf %32, %33 : vector<4x128xf32>
    %35 = vector.extract_strided_slice %3 {offsets = [0, 2048], sizes = [4, 128], strides = [1, 1]} : vector<4x4608xf32> to vector<4x128xf32>
    %36 = arith.maximumf %34, %35 : vector<4x128xf32>
    %37 = vector.extract_strided_slice %3 {offsets = [0, 2176], sizes = [4, 128], strides = [1, 1]} : vector<4x4608xf32> to vector<4x128xf32>
    %38 = arith.maximumf %36, %37 : vector<4x128xf32>
    %39 = vector.extract_strided_slice %3 {offsets = [0, 2304], sizes = [4, 128], strides = [1, 1]} : vector<4x4608xf32> to vector<4x128xf32>
    %40 = arith.maximumf %38, %39 : vector<4x128xf32>
    %41 = vector.extract_strided_slice %3 {offsets = [0, 2432], sizes = [4, 128], strides = [1, 1]} : vector<4x4608xf32> to vector<4x128xf32>
    %42 = arith.maximumf %40, %41 : vector<4x128xf32>
    %43 = vector.extract_strided_slice %3 {offsets = [0, 2560], sizes = [4, 128], strides = [1, 1]} : vector<4x4608xf32> to vector<4x128xf32>
    %44 = arith.maximumf %42, %43 : vector<4x128xf32>
    %45 = vector.extract_strided_slice %3 {offsets = [0, 2688], sizes = [4, 128], strides = [1, 1]} : vector<4x4608xf32> to vector<4x128xf32>
    %46 = arith.maximumf %44, %45 : vector<4x128xf32>
    %47 = vector.extract_strided_slice %3 {offsets = [0, 2816], sizes = [4, 128], strides = [1, 1]} : vector<4x4608xf32> to vector<4x128xf32>
    %48 = arith.maximumf %46, %47 : vector<4x128xf32>
    %49 = vector.extract_strided_slice %3 {offsets = [0, 2944], sizes = [4, 128], strides = [1, 1]} : vector<4x4608xf32> to vector<4x128xf32>
    %50 = arith.maximumf %48, %49 : vector<4x128xf32>
    %51 = vector.extract_strided_slice %3 {offsets = [0, 3072], sizes = [4, 128], strides = [1, 1]} : vector<4x4608xf32> to vector<4x128xf32>
    %52 = arith.maximumf %50, %51 : vector<4x128xf32>
    %53 = vector.extract_strided_slice %3 {offsets = [0, 3200], sizes = [4, 128], strides = [1, 1]} : vector<4x4608xf32> to vector<4x128xf32>
    %54 = arith.maximumf %52, %53 : vector<4x128xf32>
    %55 = vector.extract_strided_slice %3 {offsets = [0, 3328], sizes = [4, 128], strides = [1, 1]} : vector<4x4608xf32> to vector<4x128xf32>
    %56 = arith.maximumf %54, %55 : vector<4x128xf32>
    %57 = vector.extract_strided_slice %3 {offsets = [0, 3456], sizes = [4, 128], strides = [1, 1]} : vector<4x4608xf32> to vector<4x128xf32>
    %58 = arith.maximumf %56, %57 : vector<4x128xf32>
    %59 = vector.extract_strided_slice %3 {offsets = [0, 3584], sizes = [4, 128], strides = [1, 1]} : vector<4x4608xf32> to vector<4x128xf32>
    %60 = arith.maximumf %58, %59 : vector<4x128xf32>
    %61 = vector.extract_strided_slice %3 {offsets = [0, 3712], sizes = [4, 128], strides = [1, 1]} : vector<4x4608xf32> to vector<4x128xf32>
    %62 = arith.maximumf %60, %61 : vector<4x128xf32>
    %63 = vector.extract_strided_slice %3 {offsets = [0, 3840], sizes = [4, 128], strides = [1, 1]} : vector<4x4608xf32> to vector<4x128xf32>
    %64 = arith.maximumf %62, %63 : vector<4x128xf32>
    %65 = vector.extract_strided_slice %3 {offsets = [0, 3968], sizes = [4, 128], strides = [1, 1]} : vector<4x4608xf32> to vector<4x128xf32>
    %66 = arith.maximumf %64, %65 : vector<4x128xf32>
    %67 = vector.extract_strided_slice %3 {offsets = [0, 4096], sizes = [4, 128], strides = [1, 1]} : vector<4x4608xf32> to vector<4x128xf32>
    %68 = arith.maximumf %66, %67 : vector<4x128xf32>
    %69 = vector.extract_strided_slice %3 {offsets = [0, 4224], sizes = [4, 128], strides = [1, 1]} : vector<4x4608xf32> to vector<4x128xf32>
    %70 = arith.maximumf %68, %69 : vector<4x128xf32>
    %71 = vector.extract_strided_slice %3 {offsets = [0, 4352], sizes = [4, 128], strides = [1, 1]} : vector<4x4608xf32> to vector<4x128xf32>
    %72 = arith.maximumf %70, %71 : vector<4x128xf32>
    %73 = vector.extract_strided_slice %3 {offsets = [0, 4480], sizes = [4, 128], strides = [1, 1]} : vector<4x4608xf32> to vector<4x128xf32>
    %74 = arith.maximumf %72, %73 : vector<4x128xf32>
    %c0_4 = arith.constant 0 : index
    %c0_5 = arith.constant 0 : index
    %75 = vector.load %arg3[%c0_4, %c0_5] : memref<4x1xf32, #tpu.memory_space<vmem>>, vector<4x1xf32>
    %76 = vector.broadcast %75 : vector<4x1xf32> to vector<4x128xf32>
    %77 = arith.addf %74, %76 : vector<4x128xf32>
    %cst_6 = arith.constant 0.000000e+00 : f32
    %78 = vector.broadcast %cst_6 : f32 to vector<4x128xf32>
    %79 = arith.maximumf %77, %78 : vector<4x128xf32>
    %c0_7 = arith.constant 0 : index
    %c0_8 = arith.constant 0 : index
    %c0_9 = arith.constant 0 : index
    %80 = vector.load %arg4[%c0_7, %c0_8, %c0_9] : memref<4x10x128xf32, #tpu.memory_space<vmem>>, vector<1x10x128xf32>
    %81 = vector.shape_cast %80 : vector<1x10x128xf32> to vector<10x128xf32>
    %82 = vector.extract_strided_slice %79 {offsets = [0, 0], sizes = [1, 128], strides = [1, 1]} : vector<4x128xf32> to vector<1x128xf32>
    %83 = vector.broadcast %82 : vector<1x128xf32> to vector<10x128xf32>
    %84 = arith.mulf %81, %83 : vector<10x128xf32>
    %c1 = arith.constant 1 : index
    %c0_10 = arith.constant 0 : index
    %c0_11 = arith.constant 0 : index
    %85 = vector.load %arg4[%c1, %c0_10, %c0_11] : memref<4x10x128xf32, #tpu.memory_space<vmem>>, vector<1x10x128xf32>
    %86 = vector.shape_cast %85 : vector<1x10x128xf32> to vector<10x128xf32>
    %87 = vector.extract_strided_slice %79 {offsets = [1, 0], sizes = [1, 128], strides = [1, 1]} : vector<4x128xf32> to vector<1x128xf32>
    %88 = vector.broadcast %87 : vector<1x128xf32> to vector<10x128xf32>
    %89 = arith.mulf %86, %88 : vector<10x128xf32>
    %90 = arith.addf %84, %89 : vector<10x128xf32>
    %c2 = arith.constant 2 : index
    %c0_12 = arith.constant 0 : index
    %c0_13 = arith.constant 0 : index
    %91 = vector.load %arg4[%c2, %c0_12, %c0_13] : memref<4x10x128xf32, #tpu.memory_space<vmem>>, vector<1x10x128xf32>
    %92 = vector.shape_cast %91 : vector<1x10x128xf32> to vector<10x128xf32>
    %93 = vector.extract_strided_slice %79 {offsets = [2, 0], sizes = [1, 128], strides = [1, 1]} : vector<4x128xf32> to vector<1x128xf32>
    %94 = vector.broadcast %93 : vector<1x128xf32> to vector<10x128xf32>
    %95 = arith.mulf %92, %94 : vector<10x128xf32>
    %96 = arith.addf %90, %95 : vector<10x128xf32>
    %c3 = arith.constant 3 : index
    %c0_14 = arith.constant 0 : index
    %c0_15 = arith.constant 0 : index
    %97 = vector.load %arg4[%c3, %c0_14, %c0_15] : memref<4x10x128xf32, #tpu.memory_space<vmem>>, vector<1x10x128xf32>
    %98 = vector.shape_cast %97 : vector<1x10x128xf32> to vector<10x128xf32>
    %99 = vector.extract_strided_slice %79 {offsets = [3, 0], sizes = [1, 128], strides = [1, 1]} : vector<4x128xf32> to vector<1x128xf32>
    %100 = vector.broadcast %99 : vector<1x128xf32> to vector<10x128xf32>
    %101 = arith.mulf %98, %100 : vector<10x128xf32>
    %102 = arith.addf %96, %101 : vector<10x128xf32>
    %c0_16 = arith.constant 0 : index
    %c0_17 = arith.constant 0 : index
    %103 = vector.load %arg5[%c0_16, %c0_17] : memref<128x8xf32, #tpu.memory_space<vmem>>, vector<128x8xf32>
    %cst_18 = arith.constant dense<0.000000e+00> : vector<10x8xf32>
    %104 = tpu.matmul %102, %103, %cst_18 {dimension_numbers = #tpu.dot_dimension_numbers<[1], [0], [0], [1], [0, 0, 1, 1], [], []>} : vector<10x128xf32>, vector<128x8xf32>, vector<10x8xf32> -> vector<10x8xf32>
    %c0_19 = arith.constant 0 : index
    %c0_20 = arith.constant 0 : index
    %105 = vector.load %arg6[%c0_19, %c0_20] : memref<10x1xf32, #tpu.memory_space<vmem>>, vector<10x1xf32>
    %106 = vector.broadcast %105 : vector<10x1xf32> to vector<10x8xf32>
    %107 = arith.addf %104, %106 : vector<10x8xf32>
    %c0_21 = arith.constant 0 : index
    %c0_22 = arith.constant 0 : index
    %c0_23 = arith.constant 0 : index
    %108 = vector.load %arg7[%c0_21, %c0_22, %c0_23] : memref<1x10x8xf32, #tpu.memory_space<vmem>>, vector<1x10x8xf32>
    %109 = vector.shape_cast %108 : vector<1x10x8xf32> to vector<10x8xf32>
    %110 = vector.shape_cast %107 : vector<10x8xf32> to vector<1x10x8xf32>
    tpu.vector_store %arg7[%c0_21, %c0_22, %c0_23], %110 {strides = array<i32>} : memref<1x10x8xf32, #tpu.memory_space<vmem>>, vector<1x10x8xf32>,
    return
  }
  func.func @transform_0(%arg0: i32) -> (i32, i32, i32) {
    %c0_i32 = arith.constant 0 : i32
    %c0_i32_0 = arith.constant 0 : i32
    %c0_i32_1 = arith.constant 0 : i32
    return %arg0, %c0_i32, %c0_i32_0 : i32, i32, i32
  }
  func.func @transform_1(%arg0: i32) -> (i32, i32) {
    %c0_i32 = arith.constant 0 : i32
    %c0_i32_0 = arith.constant 0 : i32
    %c0_i32_1 = arith.constant 0 : i32
    return %c0_i32, %c0_i32_0 : i32, i32
  }
  func.func @transform_2(%arg0: i32) -> (i32, i32) {
    %c0_i32 = arith.constant 0 : i32
    %c0_i32_0 = arith.constant 0 : i32
    %c0_i32_1 = arith.constant 0 : i32
    return %c0_i32, %c0_i32_0 : i32, i32
  }
  func.func @transform_3(%arg0: i32) -> (i32, i32, i32) {
    %c0_i32 = arith.constant 0 : i32
    %c0_i32_0 = arith.constant 0 : i32
    %c0_i32_1 = arith.constant 0 : i32
    %c0_i32_2 = arith.constant 0 : i32
    return %c0_i32, %c0_i32_0, %c0_i32_1 : i32, i32, i32
  }
  func.func @transform_4(%arg0: i32) -> (i32, i32) {
    %c0_i32 = arith.constant 0 : i32
    %c0_i32_0 = arith.constant 0 : i32
    %c0_i32_1 = arith.constant 0 : i32
    return %c0_i32, %c0_i32_0 : i32, i32
  }
  func.func @transform_5(%arg0: i32) -> (i32, i32) {
    %c0_i32 = arith.constant 0 : i32
    %c0_i32_0 = arith.constant 0 : i32
    %c0_i32_1 = arith.constant 0 : i32
    return %c0_i32, %c0_i32_0 : i32, i32
  }
  func.func @transform_6(%arg0: i32) -> (i32, i32, i32) {
    %c0_i32 = arith.constant 0 : i32
    %c0_i32_0 = arith.constant 0 : i32
    %c0_i32_1 = arith.constant 0 : i32
    return %arg0, %c0_i32, %c0_i32_0 : i32, i32, i32
  }
}

</mosaic_0001>

<bundles_post_ra>
// kernel: netc_forward.2
= control target key start
LH: loop header
LB: loop body
LE: loop exit
PB: predicated region body
PF: predicated region fallthrough
CT: control target
= control target key end

     0   :  { %v3265_v4 = vlaneseq  ;;  %v6294_v9 = vmov 0.0   ;;  %vm3984_vm1 = vcmask 654336   ;;  %vm5455_vm2 = vcmask 58368   ;;  %s7690_s0 = inlined_call_operand.vmem [shape: f32[4,80], index: 0, kind: input, shape index: {}]   ;;  %s7691_s1 = inlined_call_operand.vmem [shape: f32[4,1], index: 1, kind: input, shape index: {}]   ;;  %s7692_s2 = inlined_call_operand.vmem [shape: f32[4,10,128], index: 2, kind: input, shape index: {}]   ;;  %s7693_s3 = inlined_call_operand.vmem [shape: f32[128,8], index: 3, kind: input, shape index: {}]   ;;  %s7694_s4 = inlined_call_operand.vmem [shape: f32[10,1], index: 4, kind: input, shape index: {}]   ;;  %s7695_s5 = inlined_call_operand.vmem [shape: f32[1,75,4608], index: 5, kind: input, shape index: {}]   ;;  %s7696_s6 = inlined_call_operand.<no memory space> [shape: f32[], index: 6, kind: input, shape index: {}]   ;;  %s7697_s7 = inlined_call_operand.vmem [shape: f32[1,10,8], index: 7, kind: output, shape index: {}]  }
   0x1   :  { %v6339_v0 = vstv %s7696_s6  ;;  %v5461_v1 = vld [vmem:[%s7695_s5 + $0x8] sm:$0xff]  ;;  %v25_v3 = vld [vmem:[%s7695_s5] sm:$0xff]  ;;  %4052 = vmatprep.mubr.f32.mxu1 %v6294_v9  ;;  %4194 = vmatprep.mubr.f32.mxu0 %v6294_v9  ;;  %v5463_v44 = vld [vmem:[%s7695_s5 + $0x18] sm:$0xff]  ;;  %vm5453_vm3 = vcmask 64512  }
   0x2   :  { %v5497_v2 = vld [vmem:[%s7695_s5 + $0x128] sm:$0xff]  ;;  %v5496_v6 = vld [vmem:[%s7695_s5 + $0x120] sm:$0xff]  ;;  %v6370_v15 = vshrl.u32 %v3265_v4, 7  ;;  %v5499_v48 = vld [vmem:[%s7695_s5 + $0x138] sm:$0xff] }
   0x3   :  { %v5897_v5 = vpack.c.bf16 %v5497_v2, %v5461_v1  ;;  %v5533_v7 = vld [vmem:[%s7695_s5 + $0x248] sm:$0xff]  ;;  %v5899_v10 = vpack.c.bf16 %v5496_v6, %v25_v3  ;;  %v5532_v12 = vld [vmem:[%s7695_s5 + $0x240] sm:$0xff]  ;;  %v5462_v55 = vld [vmem:[%s7695_s5 + $0x10] sm:$0xff]  ;;  %v5917_v58 = vpack.c.bf16 %v5499_v48, %v5463_v44 }
   0x4   :  { %v5569_v8 = vld [vmem:[%s7695_s5 + $0x368] sm:$0xff]  ;;  %v5568_v13 = vld [vmem:[%s7695_s5 + $0x360] sm:$0xff]  ;;  %v6376_v18 = vadd.s32 72, %v6370_v15  ;;  %v5498_v56 = vld [vmem:[%s7695_s5 + $0x130] sm:$0xff] }
   0x5   :  { %v5901_v11 = vpack.c.bf16 %v5569_v8, %v5533_v7  ;;  %v5605_v14 = vld [vmem:[%s7695_s5 + $0x488] sm:$0xff]  ;;  %5898 = vmatprep.subr.bf16.mxu1 %v5897_v5  ;;  %v5903_v17 = vpack.c.bf16 %v5568_v13, %v5532_v12  ;;  %v5604_v20 = vld [vmem:[%s7695_s5 + $0x480] sm:$0xff]  ;;  %v5535_v59 = vld [vmem:[%s7695_s5 + $0x258] sm:$0xff]  ;;  %v5919_v7 = vpack.c.bf16 %v5498_v56, %v5462_v55 }
   0x6   :  { %v5641_v16 = vld [vmem:[%s7695_s5 + $0x5a8] sm:$0xff]  ;;  %5900 = vmatpush1.bf16.msra.mxu1 %v5899_v10  ;;  %v5640_v21 = vld [vmem:[%s7695_s5 + $0x5a0] sm:$0xff]  ;;  %vm3268_vm0 = vcmp.lt.s32.totalorder %v6376_v18, 75  ;;  %v5571_v63 = vld [vmem:[%s7695_s5 + $0x378] sm:$0xff] }
   0x7   :  { %5902 = vmatprep.subr.bf16.mxu1 %v5901_v11  ;;  %v5905_v19 = vpack.c.bf16 %v5641_v16, %v5605_v14  ;;  %v5677_v22 = vld [vmem:[%s7695_s5 + $0x6c8] sm:$0xff]  ;;  %v5907_v25 = vpack.c.bf16 %v5640_v21, %v5604_v20  ;;  %v5676_v26 = vld [vmem:[%s7695_s5 + $0x6c0] sm:$0xff]  ;;  %v5921_v11 = vpack.c.bf16 %v5571_v63, %v5535_v59  ;;  %v5534_v12 = vld [vmem:[%s7695_s5 + $0x250] sm:$0xff] }
   0x8   :  { %v5713_v23 = vld [vmem:[%s7695_s5 + $0x7e8] sm:$0xff]  ;;  %v5712_v27 = vld [vmem:[%s7695_s5 + $0x7e0] sm:$0xff]  ;;  %v5570_v13 = vld [vmem:[%s7695_s5 + $0x370] sm:$0xff] }
   0x9   :  { %v5785_v24 = vld [vmem:[%s7695_s5 + $0xa28] sm:$0xff]  ;;  %v5909_v28 = vpack.c.bf16 %v5713_v23, %v5677_v22  ;;  %v5784_v33 = vld [vmem:[%s7695_s5 + $0xa20] sm:$0xff]  ;;  %v5911_v39 = vpack.c.bf16 %v5712_v27, %v5676_v26  ;;  %v5607_v16 = vld [vmem:[%s7695_s5 + $0x498] sm:$0xff] }
   0xa   :  { %5904 = vmatpush1.bf16.msra.mxu1 %v5903_v17  ;;  %v5749_v29 = vld [vmem:[%s7695_s5 + $0x908] sm:$0xff]  ;;  %v3279_v32 = vsel %vm3268_vm0, %v5785_v24, %v6339_v0  ;;  %v5464_v35 = vld [vmem:[%s7695_s5 + $0x20] sm:$0xff]  ;;  %v3269_v43 = vsel %vm3268_vm0, %v5784_v33, %v6339_v0  ;;  %v5643_v17 = vld [vmem:[%s7695_s5 + $0x5b8] sm:$0xff]  ;;  %v5923_v24 = vpack.c.bf16 %v5570_v13, %v5534_v12 }
   0xb   :  { %5906 = vmatprep.subr.bf16.mxu1 %v5905_v19  ;;  %v5465_v30 = vld [vmem:[%s7695_s5 + $0x28] sm:$0xff]  ;;  %v5500_v36 = vld [vmem:[%s7695_s5 + $0x140] sm:$0xff]  ;;  %v5913_v42 = vpack.c.bf16 %v3279_v32, %v5749_v29  ;;  %v5606_v26 = vld [vmem:[%s7695_s5 + $0x490] sm:$0xff] }
   0xc   :  { %v5501_v31 = vld [vmem:[%s7695_s5 + $0x148] sm:$0xff]  ;;  %v5939_v37 = vpack.c.bf16 %v5500_v36, %v5464_v35  ;;  %v5748_v40 = vld [vmem:[%s7695_s5 + $0x900] sm:$0xff]  ;;  %v5642_v27 = vld [vmem:[%s7695_s5 + $0x5b0] sm:$0xff] }
   0xd   :  { %v5937_v34 = vpack.c.bf16 %v5501_v31, %v5465_v30  ;;  %v5537_v38 = vld [vmem:[%s7695_s5 + $0x268] sm:$0xff]  ;;  %v5536_v46 = vld [vmem:[%s7695_s5 + $0x260] sm:$0xff]  ;;  %v5915_v54 = vpack.c.bf16 %v3269_v43, %v5748_v40  ;;  %v5715_v30 = vld [vmem:[%s7695_s5 + $0x7f8] sm:$0xff] }
   0xe   :  { %5908 = vmatpush1.bf16.msra.mxu1 %v5907_v25  ;;  %v5573_v41 = vld [vmem:[%s7695_s5 + $0x388] sm:$0xff]  ;;  %v5572_v47 = vld [vmem:[%s7695_s5 + $0x380] sm:$0xff]  ;;  %v5925_v25 = vpack.c.bf16 %v5643_v17, %v5607_v16  ;;  %v5714_v40 = vld [vmem:[%s7695_s5 + $0x7f0] sm:$0xff] }
   0xf   :  { %5938 = vmatprep.subr.bf16.mxu0 %v5937_v34  ;;  %5910 = vmatprep.subr.bf16.mxu1 %v5909_v28  ;;  %v5941_v45 = vpack.c.bf16 %v5573_v41, %v5537_v38  ;;  %v5943_v49 = vpack.c.bf16 %v5572_v47, %v5536_v46  ;;  %v5609_v50 = vld [vmem:[%s7695_s5 + $0x4a8] sm:$0xff]  ;;  %v5608_v53 = vld [vmem:[%s7695_s5 + $0x4a0] sm:$0xff]  ;;  %v5679_v28 = vld [vmem:[%s7695_s5 + $0x6d8] sm:$0xff] }
  0x10   :  { %5940 = vmatpush1.bf16.msra.mxu0 %v5939_v37  ;;  %v5645_v51 = vld [vmem:[%s7695_s5 + $0x5c8] sm:$0xff]  ;;  %v5644_v57 = vld [vmem:[%s7695_s5 + $0x5c0] sm:$0xff]  ;;  %v5787_v34 = vld [vmem:[%s7695_s5 + $0xa38] sm:$0xff]  ;;  %v5927_v37 = vpack.c.bf16 %v5642_v27, %v5606_v26  ;;  %v5929_v38 = vpack.c.bf16 %v5715_v30, %v5679_v28 }
  0x11   :  { %5942 = vmatprep.subr.bf16.mxu0 %v5941_v45  ;;  %v5945_v52 = vpack.c.bf16 %v5645_v51, %v5609_v50  ;;  %v5947_v60 = vpack.c.bf16 %v5644_v57, %v5608_v53  ;;  %v5681_v61 = vld [vmem:[%s7695_s5 + $0x6e8] sm:$0xff]  ;;  %v5680_v2 = vld [vmem:[%s7695_s5 + $0x6e0] sm:$0xff]  ;;  %v5751_v41 = vld [vmem:[%s7695_s5 + $0x918] sm:$0xff]  ;;  %v3299_v43 = vsel %vm3268_vm0, %v5787_v34, %v6339_v0 }
  0x12   :  { %5912 = vmatpush1.bf16.msra.mxu1 %v5911_v39  ;;  %v5717_v62 = vld [vmem:[%s7695_s5 + $0x808] sm:$0xff]  ;;  %v5716_v3 = vld [vmem:[%s7695_s5 + $0x800] sm:$0xff]  ;;  %v5678_v39 = vld [vmem:[%s7695_s5 + $0x6d0] sm:$0xff]  ;;  %v5933_v51 = vpack.c.bf16 %v3299_v43, %v5751_v41 }
  0x13   :  { %5914 = vmatprep.subr.bf16.mxu1 %v5913_v42  ;;  %v5949_v1 = vpack.c.bf16 %v5717_v62, %v5681_v61  ;;  %v5753_v4 = vld [vmem:[%s7695_s5 + $0x928] sm:$0xff]  ;;  %v6490_v6 = vld [vmem:[%s7690_s0] sm:$0xf]  ;;  %v5951_v14 = vpack.c.bf16 %v5716_v3, %v5680_v2  ;;  %v5786_v44 = vld [vmem:[%s7695_s5 + $0xa30] sm:$0xff]  ;;  %v5931_v50 = vpack.c.bf16 %v5714_v40, %v5678_v39 }
  0x14   :  { %5944 = vmatpush1.bf16.msra.mxu0 %v5943_v49  ;;  %v5789_v5 = vld [vmem:[%s7695_s5 + $0xa48] sm:$0xff]  ;;  %v5788_v10 = vld [vmem:[%s7695_s5 + $0xa40] sm:$0xff]  ;;  %v3289_v53 = vsel %vm3268_vm0, %v5786_v44, %v6339_v0  ;;  %v5503_v56 = vld [vmem:[%s7695_s5 + $0x158] sm:$0xff] }
  0x15   :  { %5946 = vmatprep.subr.bf16.mxu0 %v5945_v52  ;;  %v3319_v8 = vsel %vm3268_vm0, %v5789_v5, %v6339_v0  ;;  %v5752_v20 = vld [vmem:[%s7695_s5 + $0x920] sm:$0xff]  ;;  %v3309_v21 = vsel %vm3268_vm0, %v5788_v10, %v6339_v0  ;;  %v5469_v22 = vld [vmem:[%s7695_s5 + $0x48] sm:$0xff]  ;;  %v5750_v52 = vld [vmem:[%s7695_s5 + $0x910] sm:$0xff] }
  0x16   :  { %5916 = vmatpush1.bf16.msra.mxu1 %v5915_v54  ;;  %v5953_v19 = vpack.c.bf16 %v3319_v8, %v5753_v4  ;;  %v5505_v23 = vld [vmem:[%s7695_s5 + $0x168] sm:$0xff]  ;;  %v5955_v29 = vpack.c.bf16 %v3309_v21, %v5752_v20  ;;  %v5468_v32 = vld [vmem:[%s7695_s5 + $0x40] sm:$0xff]  ;;  %v5467_v54 = vld [vmem:[%s7695_s5 + $0x38] sm:$0xff]  ;;  %v5935_v62 = vpack.c.bf16 %v3289_v53, %v5750_v52 }
  0x17   :  { %5918 = vmatprep.subr.bf16.mxu1 %v5917_v58  ;;  %v5977_v31 = vpack.c.bf16 %v5505_v23, %v5469_v22  ;;  %v5504_v33 = vld [vmem:[%s7695_s5 + $0x160] sm:$0xff]  ;;  %v5541_v35 = vld [vmem:[%s7695_s5 + $0x288] sm:$0xff]  ;;  %v5466_v2 = vld [vmem:[%s7695_s5 + $0x30] sm:$0xff] }
  0x18   :  { %5948 = vmatpush1.bf16.msra.mxu0 %v5947_v60  ;;  %v5577_v36 = vld [vmem:[%s7695_s5 + $0x3a8] sm:$0xff]  ;;  %v5979_v42 = vpack.c.bf16 %v5504_v33, %v5468_v32  ;;  %v5540_v46 = vld [vmem:[%s7695_s5 + $0x280] sm:$0xff]  ;;  %v5502_v3 = vld [vmem:[%s7695_s5 + $0x150] sm:$0xff] }
  0x19   :  { %5950 = vmatprep.subr.bf16.mxu0 %v5949_v1  ;;  %5820 = vmatmul.mubr.msk.f32.vlgmr.msra.gmra.mrb[0].mxu1 %vm3984_vm1, %v6490_v6  ;;  %v5981_v45 = vpack.c.bf16 %v5577_v36, %v5541_v35  ;;  %v5576_v47 = vld [vmem:[%s7695_s5 + $0x3a0] sm:$0xff]  ;;  %v5613_v48 = vld [vmem:[%s7695_s5 + $0x4c8] sm:$0xff]  ;;  %v5957_v1 = vpack.c.bf16 %v5503_v56, %v5467_v54  ;;  %v5539_v4 = vld [vmem:[%s7695_s5 + $0x278] sm:$0xff]  ;;  %v5959_v16 = vpack.c.bf16 %v5502_v3, %v5466_v2 }
  0x1a   :  { %5920 = vmatpush1.bf16.msra.mxu1 %v5919_v7  ;;  %4123 = vmatprep.mubr.f32.mxu1 %v6294_v9  ;;  %v5649_v49 = vld [vmem:[%s7695_s5 + $0x5e8] sm:$0xff]  ;;  %v5983_v55 = vpack.c.bf16 %v5576_v47, %v5540_v46  ;;  %v5612_v58 = vld [vmem:[%s7695_s5 + $0x4c0] sm:$0xff]  ;;  %v5575_v7 = vld [vmem:[%s7695_s5 + $0x398] sm:$0xff] }
  0x1b   :  { %5922 = vmatprep.subr.bf16.mxu1 %v5921_v11  ;;  %v5985_v57 = vpack.c.bf16 %v5649_v49, %v5613_v48  ;;  %v5648_v59 = vld [vmem:[%s7695_s5 + $0x5e0] sm:$0xff]  ;;  %v5685_v60 = vld [vmem:[%s7695_s5 + $0x708] sm:$0xff]  ;;  %v5961_v17 = vpack.c.bf16 %v5575_v7, %v5539_v4  ;;  %v5574_v20 = vld [vmem:[%s7695_s5 + $0x390] sm:$0xff] }
  0x1c   :  { %5952 = vmatpush1.bf16.msra.mxu0 %v5951_v14  ;;  %v5721_v61 = vld [vmem:[%s7695_s5 + $0x828] sm:$0xff]  ;;  %v5987_v5 = vpack.c.bf16 %v5648_v59, %v5612_v58  ;;  %v5684_v10 = vld [vmem:[%s7695_s5 + $0x700] sm:$0xff]  ;;  %v5611_v22 = vld [vmem:[%s7695_s5 + $0x4b8] sm:$0xff] }
  0x1d   :  { %5954 = vmatprep.subr.bf16.mxu0 %v5953_v19  ;;  %v5793_v63 = vld [vmem:[%s7695_s5 + $0xa68] sm:$0xff]  ;;  %v5989_v8 = vpack.c.bf16 %v5721_v61, %v5685_v60  ;;  %v5720_v11 = vld [vmem:[%s7695_s5 + $0x820] sm:$0xff]  ;;  %v5538_v19 = vld [vmem:[%s7695_s5 + $0x270] sm:$0xff] }
  0x1e   :  { %5924 = vmatpush1.bf16.msra.mxu1 %v5923_v24  ;;  %v5757_v12 = vld [vmem:[%s7695_s5 + $0x948] sm:$0xff]  ;;  %v3359_v13 = vsel %vm3268_vm0, %v5793_v63, %v6339_v0  ;;  %v5792_v14 = vld [vmem:[%s7695_s5 + $0xa60] sm:$0xff]  ;;  %v5991_v21 = vpack.c.bf16 %v5720_v11, %v5684_v10  ;;  %v5647_v23 = vld [vmem:[%s7695_s5 + $0x5d8] sm:$0xff] }
  0x1f   :  { %5926 = vmatprep.subr.bf16.mxu1 %v5925_v25  ;;  %v5993_v24 = vpack.c.bf16 %v3359_v13, %v5757_v12  ;;  %v5756_v25 = vld [vmem:[%s7695_s5 + $0x940] sm:$0xff]  ;;  %v3349_v26 = vsel %vm3268_vm0, %v5792_v14, %v6339_v0  ;;  %v5473_v27 = vld [vmem:[%s7695_s5 + $0x68] sm:$0xff]  ;;  %v5965_v30 = vpack.c.bf16 %v5647_v23, %v5611_v22  ;;  %v5646_v32 = vld [vmem:[%s7695_s5 + $0x5d0] sm:$0xff] }
  0x20   :  { %5956 = vmatpush1.bf16.msra.mxu0 %v5955_v29  ;;  %v5509_v28 = vld [vmem:[%s7695_s5 + $0x188] sm:$0xff]  ;;  %v5963_v29 = vpack.c.bf16 %v5574_v20, %v5538_v19  ;;  %v5683_v33 = vld [vmem:[%s7695_s5 + $0x6f8] sm:$0xff]  ;;  %v5995_v34 = vpack.c.bf16 %v3349_v26, %v5756_v25  ;;  %v5682_v44 = vld [vmem:[%s7695_s5 + $0x6f0] sm:$0xff] }
  0x21   :  { %5978 = vmatprep.subr.bf16.mxu0 %v5977_v31  ;;  %v5610_v31 = vld [vmem:[%s7695_s5 + $0x4b0] sm:$0xff]  ;;  %v5719_v35 = vld [vmem:[%s7695_s5 + $0x818] sm:$0xff]  ;;  %v6017_v36 = vpack.c.bf16 %v5509_v28, %v5473_v27  ;;  %v5545_v40 = vld [vmem:[%s7695_s5 + $0x2a8] sm:$0xff] }
  0x22   :  { %5928 = vmatpush1.bf16.msra.mxu1 %v5927_v37  ;;  %v5472_v37 = vld [vmem:[%s7695_s5 + $0x60] sm:$0xff]  ;;  %v5791_v39 = vld [vmem:[%s7695_s5 + $0xa58] sm:$0xff]  ;;  %v5581_v41 = vld [vmem:[%s7695_s5 + $0x3c8] sm:$0xff]  ;;  %v5969_v43 = vpack.c.bf16 %v5719_v35, %v5683_v33 }
  0x23   :  { %5822 = vmatmul.mubr.msk.f32.vlgmr.msra.gmra.mrb[0].mxu0 %vm3984_vm1, %v6490_v6  ;;  %5930 = vmatprep.subr.bf16.mxu1 %v5929_v38  ;;  %v5508_v38 = vld [vmem:[%s7695_s5 + $0x180] sm:$0xff]  ;;  %v5755_v46 = vld [vmem:[%s7695_s5 + $0x938] sm:$0xff]  ;;  %v3339_v48 = vsel %vm3268_vm0, %v5791_v39, %v6339_v0  ;;  %v5790_v49 = vld [vmem:[%s7695_s5 + $0xa50] sm:$0xff] }
  0x24   :  { %5980 = vmatpush1.bf16.msra.mxu0 %v5979_v42  ;;  %4336 = vmatprep.mubr.f32.mxu0 %v6294_v9  ;;  %v5967_v42 = vpack.c.bf16 %v5646_v32, %v5610_v31  ;;  %v6019_v47 = vpack.c.bf16 %v5508_v38, %v5472_v37  ;;  %v5580_v52 = vld [vmem:[%s7695_s5 + $0x3c0] sm:$0xff]  ;;  %v5617_v53 = vld [vmem:[%s7695_s5 + $0x4e8] sm:$0xff]  ;;  %v5973_v56 = vpack.c.bf16 %v3339_v48, %v5755_v46  ;;  %v5471_v59 = vld [vmem:[%s7695_s5 + $0x58] sm:$0xff] }
  0x25   :  { %5982 = vmatprep.subr.bf16.mxu0 %v5981_v45  ;;  %v5718_v45 = vld [vmem:[%s7695_s5 + $0x810] sm:$0xff]  ;;  %v5653_v54 = vld [vmem:[%s7695_s5 + $0x608] sm:$0xff]  ;;  %v3329_v58 = vsel %vm3268_vm0, %v5790_v49, %v6339_v0  ;;  %v5507_v61 = vld [vmem:[%s7695_s5 + $0x178] sm:$0xff] }
  0x26   :  { %5932 = vmatpush1.bf16.msra.mxu1 %v5931_v50  ;;  %v6021_v50 = vpack.c.bf16 %v5581_v41, %v5545_v40  ;;  %v5616_v63 = vld [vmem:[%s7695_s5 + $0x4e0] sm:$0xff]  ;;  %v5689_v2 = vld [vmem:[%s7695_s5 + $0x728] sm:$0xff]  ;;  %v5997_v7 = vpack.c.bf16 %v5507_v61, %v5471_v59  ;;  %v5506_v10 = vld [vmem:[%s7695_s5 + $0x170] sm:$0xff] }
  0x27   :  { %5934 = vmatprep.subr.bf16.mxu1 %v5933_v51  ;;  %v5544_v51 = vld [vmem:[%s7695_s5 + $0x2a0] sm:$0xff]  ;;  %v5725_v3 = vld [vmem:[%s7695_s5 + $0x848] sm:$0xff]  ;;  %v5543_v11 = vld [vmem:[%s7695_s5 + $0x298] sm:$0xff] }
  0x28   :  { %5984 = vmatpush1.bf16.msra.mxu0 %v5983_v55  ;;  %v5971_v55 = vpack.c.bf16 %v5718_v45, %v5682_v44  ;;  %v6023_v60 = vpack.c.bf16 %v5580_v52, %v5544_v51  ;;  %v5579_v13 = vld [vmem:[%s7695_s5 + $0x3b8] sm:$0xff]  ;;  %v6029_v14 = vpack.c.bf16 %v5725_v3, %v5689_v2  ;;  %v5761_v19 = vld [vmem:[%s7695_s5 + $0x968] sm:$0xff]  ;;  %v5578_v25 = vld [vmem:[%s7695_s5 + $0x3b0] sm:$0xff] }
  0x29   :  { %5986 = vmatprep.subr.bf16.mxu0 %v5985_v57  ;;  %v5754_v57 = vld [vmem:[%s7695_s5 + $0x930] sm:$0xff]  ;;  %v6001_v23 = vpack.c.bf16 %v5579_v13, %v5543_v11  ;;  %v5615_v27 = vld [vmem:[%s7695_s5 + $0x4d8] sm:$0xff]  ;;  %v5477_v32 = vld [vmem:[%s7695_s5 + $0x88] sm:$0xff] }
  0x2a   :  { %5936 = vmatpush1.bf16.msra.mxu1 %v5935_v62  ;;  %v6025_v62 = vpack.c.bf16 %v5653_v54, %v5617_v53  ;;  %v5975_v4 = vpack.c.bf16 %v3329_v58, %v5754_v57  ;;  %v5651_v28 = vld [vmem:[%s7695_s5 + $0x5f8] sm:$0xff]  ;;  %v5513_v33 = vld [vmem:[%s7695_s5 + $0x1a8] sm:$0xff]  ;;  %v5650_v37 = vld [vmem:[%s7695_s5 + $0x5f0] sm:$0xff] }
  0x2b   :  { %5958 = vmatprep.subr.bf16.mxu1 %v5957_v1  ;;  %v5652_v1 = vld [vmem:[%s7695_s5 + $0x600] sm:$0xff]  ;;  %v6005_v35 = vpack.c.bf16 %v5651_v28, %v5615_v27  ;;  %v5687_v38 = vld [vmem:[%s7695_s5 + $0x718] sm:$0xff]  ;;  %v6057_v41 = vpack.c.bf16 %v5513_v33, %v5477_v32  ;;  %v5549_v45 = vld [vmem:[%s7695_s5 + $0x2c8] sm:$0xff] }
  0x2c   :  { %5988 = vmatpush1.bf16.msra.mxu0 %v5987_v5  ;;  %v5797_v5 = vld [vmem:[%s7695_s5 + $0xa88] sm:$0xff]  ;;  %v6027_v12 = vpack.c.bf16 %v5652_v1, %v5616_v63  ;;  %v5723_v40 = vld [vmem:[%s7695_s5 + $0x838] sm:$0xff]  ;;  %v5686_v49 = vld [vmem:[%s7695_s5 + $0x710] sm:$0xff] }
  0x2d   :  { %5990 = vmatprep.subr.bf16.mxu0 %v5989_v8  ;;  %5821 = vmatmul.mubr.msk.f32.vlgmr.msra.gmra.mrb[2].mxu1 %vm3984_vm1, %v6490_v6  ;;  %v5470_v8 = vld [vmem:[%s7695_s5 + $0x50] sm:$0xff]  ;;  %v3399_v20 = vsel %vm3268_vm0, %v5797_v5, %v6339_v0  ;;  %v5795_v44 = vld [vmem:[%s7695_s5 + $0xa78] sm:$0xff]  ;;  %v5585_v46 = vld [vmem:[%s7695_s5 + $0x3e8] sm:$0xff]  ;;  %v6009_v48 = vpack.c.bf16 %v5723_v40, %v5687_v38 }
  0x2e   :  { %5960 = vmatpush1.bf16.msra.mxu1 %v5959_v16  ;;  %4265 = vmatprep.mubr.f32.mxu1 %v6294_v9  ;;  %v5688_v16 = vld [vmem:[%s7695_s5 + $0x720] sm:$0xff]  ;;  %v5999_v22 = vpack.c.bf16 %v5506_v10, %v5470_v8  ;;  %v5759_v51 = vld [vmem:[%s7695_s5 + $0x958] sm:$0xff]  ;;  %v3379_v53 = vsel %vm3268_vm0, %v5795_v44, %v6339_v0  ;;  %v5794_v54 = vld [vmem:[%s7695_s5 + $0xa70] sm:$0xff] }
  0x2f   :  { %5962 = vmatprep.subr.bf16.mxu1 %v5961_v17  ;;  %v5724_v17 = vld [vmem:[%s7695_s5 + $0x840] sm:$0xff]  ;;  %v5621_v58 = vld [vmem:[%s7695_s5 + $0x508] sm:$0xff]  ;;  %v6013_v61 = vpack.c.bf16 %v3379_v53, %v5759_v51  ;;  %v3369_v63 = vsel %vm3268_vm0, %v5794_v54, %v6339_v0  ;;  %v5475_v1 = vld [vmem:[%s7695_s5 + $0x78] sm:$0xff] }
  0x30   :  { %5992 = vmatpush1.bf16.msra.mxu0 %v5991_v21  ;;  %v5796_v21 = vld [vmem:[%s7695_s5 + $0xa80] sm:$0xff]  ;;  %v6031_v26 = vpack.c.bf16 %v5724_v17, %v5688_v16  ;;  %v5657_v59 = vld [vmem:[%s7695_s5 + $0x628] sm:$0xff]  ;;  %v5511_v3 = vld [vmem:[%s7695_s5 + $0x198] sm:$0xff] }
  0x31   :  { %5994 = vmatprep.subr.bf16.mxu0 %v5993_v24  ;;  %v5542_v24 = vld [vmem:[%s7695_s5 + $0x290] sm:$0xff]  ;;  %v3389_v31 = vsel %vm3268_vm0, %v5796_v21, %v6339_v0  ;;  %v5584_v57 = vld [vmem:[%s7695_s5 + $0x3e0] sm:$0xff]  ;;  %v5693_v8 = vld [vmem:[%s7695_s5 + $0x748] sm:$0xff]  ;;  %v6037_v13 = vpack.c.bf16 %v5511_v3, %v5475_v1 }
  0x32   :  { %5964 = vmatpush1.bf16.msra.mxu1 %v5963_v29  ;;  %v6033_v29 = vpack.c.bf16 %v3399_v20, %v5761_v19  ;;  %v5620_v5 = vld [vmem:[%s7695_s5 + $0x500] sm:$0xff]  ;;  %v5729_v10 = vld [vmem:[%s7695_s5 + $0x868] sm:$0xff]  ;;  %v5510_v16 = vld [vmem:[%s7695_s5 + $0x190] sm:$0xff] }
  0x33   :  { %5966 = vmatprep.subr.bf16.mxu1 %v5965_v30  ;;  %v5760_v30 = vld [vmem:[%s7695_s5 + $0x960] sm:$0xff]  ;;  %v5547_v17 = vld [vmem:[%s7695_s5 + $0x2b8] sm:$0xff]  ;;  %v6069_v21 = vpack.c.bf16 %v5729_v10, %v5693_v8  ;;  %v5517_v38 = vld [vmem:[%s7695_s5 + $0x1c8] sm:$0xff] }
  0x34   :  { %5996 = vmatpush1.bf16.msra.mxu0 %v5995_v34  ;;  %v6003_v34 = vpack.c.bf16 %v5578_v25, %v5542_v24  ;;  %v6035_v39 = vpack.c.bf16 %v3389_v31, %v5760_v30  ;;  %v5583_v20 = vld [vmem:[%s7695_s5 + $0x3d8] sm:$0xff]  ;;  %v5765_v24 = vld [vmem:[%s7695_s5 + $0x988] sm:$0xff]  ;;  %v5582_v30 = vld [vmem:[%s7695_s5 + $0x3d0] sm:$0xff] }
  0x35   :  { %6018 = vmatprep.subr.bf16.mxu0 %v6017_v36  ;;  %v5614_v36 = vld [vmem:[%s7695_s5 + $0x4d0] sm:$0xff]  ;;  %v6041_v28 = vpack.c.bf16 %v5583_v20, %v5547_v17  ;;  %v5619_v32 = vld [vmem:[%s7695_s5 + $0x4f8] sm:$0xff]  ;;  %v5589_v51 = vld [vmem:[%s7695_s5 + $0x408] sm:$0xff] }
  0x36   :  { %5968 = vmatpush1.bf16.msra.mxu1 %v5967_v42  ;;  %v5476_v42 = vld [vmem:[%s7695_s5 + $0x80] sm:$0xff]  ;;  %v5655_v33 = vld [vmem:[%s7695_s5 + $0x618] sm:$0xff]  ;;  %v5690_v54 = vld [vmem:[%s7695_s5 + $0x730] sm:$0xff] }
  0x37   :  { %5824 = vmatmul.mubr.msk.f32.vlgmr.msra.gmra.mrb[2].mxu0 %vm3984_vm1, %v6490_v6  ;;  %5970 = vmatprep.subr.bf16.mxu1 %v5969_v43  ;;  %v5512_v43 = vld [vmem:[%s7695_s5 + $0x1a0] sm:$0xff]  ;;  %v6045_v40 = vpack.c.bf16 %v5655_v33, %v5619_v32  ;;  %v5661_v1 = vld [vmem:[%s7695_s5 + $0x648] sm:$0xff]  ;;  %v5515_v10 = vld [vmem:[%s7695_s5 + $0x1b8] sm:$0xff] }
  0x38   :  { %6020 = vmatpush1.bf16.msra.mxu0 %v6019_v47  ;;  %4478 = vmatprep.mubr.f32.mxu0 %v6294_v9  ;;  %v6007_v47 = vpack.c.bf16 %v5650_v37, %v5614_v36  ;;  %v6059_v52 = vpack.c.bf16 %v5512_v43, %v5476_v42  ;;  %v5481_v37 = vld [vmem:[%s7695_s5 + $0xa8] sm:$0xff]  ;;  %v5654_v42 = vld [vmem:[%s7695_s5 + $0x610] sm:$0xff]  ;;  %v5691_v43 = vld [vmem:[%s7695_s5 + $0x738] sm:$0xff] }
  0x39   :  { %6022 = vmatprep.subr.bf16.mxu0 %v6021_v50  ;;  %v5722_v50 = vld [vmem:[%s7695_s5 + $0x830] sm:$0xff] }
  0x3a   :  { %5972 = vmatpush1.bf16.msra.mxu1 %v5971_v55  ;;  %v6061_v55 = vpack.c.bf16 %v5585_v46, %v5549_v45  ;;  %v5727_v45 = vld [vmem:[%s7695_s5 + $0x858] sm:$0xff]  ;;  %v6097_v46 = vpack.c.bf16 %v5517_v38, %v5481_v37 }
  0x3b   :  { %5974 = vmatprep.subr.bf16.mxu1 %v5973_v56  ;;  %v5548_v56 = vld [vmem:[%s7695_s5 + $0x2c0] sm:$0xff]  ;;  %v6049_v53 = vpack.c.bf16 %v5727_v45, %v5691_v43  ;;  %v5623_v37 = vld [vmem:[%s7695_s5 + $0x518] sm:$0xff]  ;;  %v5521_v43 = vld [vmem:[%s7695_s5 + $0x1e8] sm:$0xff] }
  0x3c   :  { %6024 = vmatpush1.bf16.msra.mxu0 %v6023_v60  ;;  %v6011_v60 = vpack.c.bf16 %v5722_v50, %v5686_v49  ;;  %v6063_v2 = vpack.c.bf16 %v5584_v57, %v5548_v56  ;;  %v5799_v49 = vld [vmem:[%s7695_s5 + $0xa98] sm:$0xff]  ;;  %v5553_v50 = vld [vmem:[%s7695_s5 + $0x2e8] sm:$0xff] }
  0x3d   :  { %6026 = vmatprep.subr.bf16.mxu0 %v6025_v62  ;;  %v5758_v62 = vld [vmem:[%s7695_s5 + $0x950] sm:$0xff]  ;;  %v5763_v56 = vld [vmem:[%s7695_s5 + $0x978] sm:$0xff] }
  0x3e   :  { %5976 = vmatpush1.bf16.msra.mxu1 %v5975_v4  ;;  %v6065_v4 = vpack.c.bf16 %v5657_v59, %v5621_v58  ;;  %v6015_v11 = vpack.c.bf16 %v3369_v63, %v5758_v62  ;;  %v3419_v58 = vsel %vm3268_vm0, %v5799_v49, %v6339_v0  ;;  %v5798_v59 = vld [vmem:[%s7695_s5 + $0xa90] sm:$0xff]  ;;  %v5588_v62 = vld [vmem:[%s7695_s5 + $0x400] sm:$0xff]  ;;  %v5625_v63 = vld [vmem:[%s7695_s5 + $0x528] sm:$0xff] }
  0x3f   :  { %5998 = vmatprep.subr.bf16.mxu1 %v5997_v7  ;;  %v5656_v7 = vld [vmem:[%s7695_s5 + $0x620] sm:$0xff]  ;;  %v6053_v3 = vpack.c.bf16 %v3419_v58, %v5763_v56  ;;  %v5659_v38 = vld [vmem:[%s7695_s5 + $0x638] sm:$0xff]  ;;  %v5593_v56 = vld [vmem:[%s7695_s5 + $0x428] sm:$0xff] }
  0x40   :  { %6028 = vmatpush1.bf16.msra.mxu0 %v6027_v12  ;;  %v5801_v12 = vld [vmem:[%s7695_s5 + $0xaa8] sm:$0xff]  ;;  %v6067_v19 = vpack.c.bf16 %v5656_v7, %v5620_v5  ;;  %v3409_v5 = vsel %vm3268_vm0, %v5798_v59, %v6339_v0  ;;  %v5479_v7 = vld [vmem:[%s7695_s5 + $0x98] sm:$0xff]  ;;  %v6085_v45 = vpack.c.bf16 %v5659_v38, %v5623_v37  ;;  %v5694_v59 = vld [vmem:[%s7695_s5 + $0x750] sm:$0xff] }
  0x41   :  { %6030 = vmatprep.subr.bf16.mxu0 %v6029_v14  ;;  %5823 = vmatmul.mubr.msk.f32.vlgmr.msra.gmra.mrb[4].mxu1 %vm3984_vm1, %v6490_v6  ;;  %v5474_v14 = vld [vmem:[%s7695_s5 + $0x70] sm:$0xff]  ;;  %v3439_v25 = vsel %vm3268_vm0, %v5801_v12, %v6339_v0  ;;  %v5624_v12 = vld [vmem:[%s7695_s5 + $0x520] sm:$0xff]  ;;  %v6077_v20 = vpack.c.bf16 %v5515_v10, %v5479_v7  ;;  %v5665_v7 = vld [vmem:[%s7695_s5 + $0x668] sm:$0xff] }
  0x42   :  { %6000 = vmatpush1.bf16.msra.mxu1 %v5999_v22  ;;  %4407 = vmatprep.mubr.f32.mxu1 %v6294_v9  ;;  %v5692_v22 = vld [vmem:[%s7695_s5 + $0x740] sm:$0xff]  ;;  %v6039_v27 = vpack.c.bf16 %v5510_v16, %v5474_v14  ;;  %v5697_v14 = vld [vmem:[%s7695_s5 + $0x768] sm:$0xff] }
  0x43   :  { %6002 = vmatprep.subr.bf16.mxu1 %v6001_v23  ;;  %v5728_v23 = vld [vmem:[%s7695_s5 + $0x860] sm:$0xff]  ;;  %v5733_v16 = vld [vmem:[%s7695_s5 + $0x888] sm:$0xff] }
  0x44   :  { %6032 = vmatpush1.bf16.msra.mxu0 %v6031_v26  ;;  %v5800_v26 = vld [vmem:[%s7695_s5 + $0xaa0] sm:$0xff]  ;;  %v6071_v31 = vpack.c.bf16 %v5728_v23, %v5692_v22  ;;  %v5514_v22 = vld [vmem:[%s7695_s5 + $0x1b0] sm:$0xff]  ;;  %v5551_v23 = vld [vmem:[%s7695_s5 + $0x2d8] sm:$0xff] }
  0x45   :  { %6034 = vmatprep.subr.bf16.mxu0 %v6033_v29  ;;  %v5546_v29 = vld [vmem:[%s7695_s5 + $0x2b0] sm:$0xff]  ;;  %v3429_v36 = vsel %vm3268_vm0, %v5800_v26, %v6339_v0  ;;  %v6109_v26 = vpack.c.bf16 %v5733_v16, %v5697_v14  ;;  %v5519_v16 = vld [vmem:[%s7695_s5 + $0x1d8] sm:$0xff] }
  0x46   :  { %6004 = vmatpush1.bf16.msra.mxu1 %v6003_v34  ;;  %v6073_v34 = vpack.c.bf16 %v3439_v25, %v5765_v24  ;;  %v5587_v25 = vld [vmem:[%s7695_s5 + $0x3f8] sm:$0xff] }
  0x47   :  { %6006 = vmatprep.subr.bf16.mxu1 %v6005_v35  ;;  %v5764_v35 = vld [vmem:[%s7695_s5 + $0x980] sm:$0xff]  ;;  %v6081_v33 = vpack.c.bf16 %v5587_v25, %v5551_v23 }
  0x48   :  { %6036 = vmatpush1.bf16.msra.mxu0 %v6035_v39  ;;  %v6043_v39 = vpack.c.bf16 %v5582_v30, %v5546_v29  ;;  %v6075_v44 = vpack.c.bf16 %v3429_v36, %v5764_v35  ;;  %v5769_v29 = vld [vmem:[%s7695_s5 + $0x9a8] sm:$0xff]  ;;  %v5586_v35 = vld [vmem:[%s7695_s5 + $0x3f0] sm:$0xff] }
  0x49   :  { %6058 = vmatprep.subr.bf16.mxu0 %v6057_v41  ;;  %v5618_v41 = vld [vmem:[%s7695_s5 + $0x4f0] sm:$0xff] }
  0x4a   :  { %6008 = vmatpush1.bf16.msra.mxu1 %v6007_v47  ;;  %v5480_v47 = vld [vmem:[%s7695_s5 + $0xa0] sm:$0xff] }
  0x4b   :  { %5826 = vmatmul.mubr.msk.f32.vlgmr.msra.gmra.mrb[4].mxu0 %vm3984_vm1, %v6490_v6  ;;  %6010 = vmatprep.subr.bf16.mxu1 %v6009_v48  ;;  %v5516_v48 = vld [vmem:[%s7695_s5 + $0x1c0] sm:$0xff] }
  0x4c   :  { %6060 = vmatpush1.bf16.msra.mxu0 %v6059_v52  ;;  %4620 = vmatprep.mubr.f32.mxu0 %v6294_v9  ;;  %v6047_v52 = vpack.c.bf16 %v5654_v42, %v5618_v41  ;;  %v6099_v57 = vpack.c.bf16 %v5516_v48, %v5480_v47  ;;  %v5485_v42 = vld [vmem:[%s7695_s5 + $0xc8] sm:$0xff]  ;;  %v5658_v47 = vld [vmem:[%s7695_s5 + $0x630] sm:$0xff]  ;;  %v5695_v48 = vld [vmem:[%s7695_s5 + $0x758] sm:$0xff] }
  0x4d   :  { %6062 = vmatprep.subr.bf16.mxu0 %v6061_v55  ;;  %v5726_v55 = vld [vmem:[%s7695_s5 + $0x850] sm:$0xff] }
  0x4e   :  { %6012 = vmatpush1.bf16.msra.mxu1 %v6011_v60  ;;  %v6101_v60 = vpack.c.bf16 %v5589_v51, %v5553_v50  ;;  %v5731_v50 = vld [vmem:[%s7695_s5 + $0x878] sm:$0xff]  ;;  %v6137_v51 = vpack.c.bf16 %v5521_v43, %v5485_v42 }
  0x4f   :  { %6014 = vmatprep.subr.bf16.mxu1 %v6013_v61  ;;  %v5552_v61 = vld [vmem:[%s7695_s5 + $0x2e0] sm:$0xff]  ;;  %v6089_v58 = vpack.c.bf16 %v5731_v50, %v5695_v48  ;;  %v5627_v42 = vld [vmem:[%s7695_s5 + $0x538] sm:$0xff]  ;;  %v5525_v48 = vld [vmem:[%s7695_s5 + $0x208] sm:$0xff] }
  0x50   :  { %6064 = vmatpush1.bf16.msra.mxu0 %v6063_v2  ;;  %v6051_v2 = vpack.c.bf16 %v5726_v55, %v5690_v54  ;;  %v6103_v8 = vpack.c.bf16 %v5588_v62, %v5552_v61  ;;  %v5803_v54 = vld [vmem:[%s7695_s5 + $0xab8] sm:$0xff]  ;;  %v5557_v55 = vld [vmem:[%s7695_s5 + $0x308] sm:$0xff] }
  0x51   :  { %6066 = vmatprep.subr.bf16.mxu0 %v6065_v4  ;;  %v5762_v4 = vld [vmem:[%s7695_s5 + $0x970] sm:$0xff]  ;;  %v5767_v61 = vld [vmem:[%s7695_s5 + $0x998] sm:$0xff] }
  0x52   :  { %6016 = vmatpush1.bf16.msra.mxu1 %v6015_v11  ;;  %v6105_v11 = vpack.c.bf16 %v5661_v1, %v5625_v63  ;;  %v6055_v17 = vpack.c.bf16 %v3409_v5, %v5762_v4  ;;  %v3459_v63 = vsel %vm3268_vm0, %v5803_v54, %v6339_v0  ;;  %v5802_v1 = vld [vmem:[%s7695_s5 + $0xab0] sm:$0xff]  ;;  %v5592_v4 = vld [vmem:[%s7695_s5 + $0x420] sm:$0xff]  ;;  %v5629_v5 = vld [vmem:[%s7695_s5 + $0x548] sm:$0xff] }
  0x53   :  { %6038 = vmatprep.subr.bf16.mxu1 %v6037_v13  ;;  %v5660_v13 = vld [vmem:[%s7695_s5 + $0x640] sm:$0xff]  ;;  %v6093_v10 = vpack.c.bf16 %v3459_v63, %v5767_v61  ;;  %v5663_v43 = vld [vmem:[%s7695_s5 + $0x658] sm:$0xff]  ;;  %v5597_v61 = vld [vmem:[%s7695_s5 + $0x448] sm:$0xff] }
  0x54   :  { %6068 = vmatpush1.bf16.msra.mxu0 %v6067_v19  ;;  %v5805_v19 = vld [vmem:[%s7695_s5 + $0xac8] sm:$0xff]  ;;  %v6107_v24 = vpack.c.bf16 %v5660_v13, %v5624_v12  ;;  %v3449_v12 = vsel %vm3268_vm0, %v5802_v1, %v6339_v0  ;;  %v5483_v13 = vld [vmem:[%s7695_s5 + $0xb8] sm:$0xff]  ;;  %v6125_v50 = vpack.c.bf16 %v5663_v43, %v5627_v42  ;;  %v5698_v1 = vld [vmem:[%s7695_s5 + $0x770] sm:$0xff] }
  0x55   :  { %6070 = vmatprep.subr.bf16.mxu0 %v6069_v21  ;;  %5825 = vmatmul.mubr.msk.f32.vlgmr.msra.gmra.mrb[6].mxu1 %vm3984_vm1, %v6490_v6  ;;  %v5478_v21 = vld [vmem:[%s7695_s5 + $0x90] sm:$0xff]  ;;  %v3479_v30 = vsel %vm3268_vm0, %v5805_v19, %v6339_v0  ;;  %v5628_v19 = vld [vmem:[%s7695_s5 + $0x540] sm:$0xff]  ;;  %v6117_v25 = vpack.c.bf16 %v5519_v16, %v5483_v13  ;;  %v5669_v13 = vld [vmem:[%s7695_s5 + $0x688] sm:$0xff] }
  0x56   :  { %6040 = vmatpush1.bf16.msra.mxu1 %v6039_v27  ;;  %4549 = vmatprep.mubr.f32.mxu1 %v6294_v9  ;;  %v5696_v27 = vld [vmem:[%s7695_s5 + $0x760] sm:$0xff]  ;;  %v6079_v32 = vpack.c.bf16 %v5514_v22, %v5478_v21  ;;  %v5701_v21 = vld [vmem:[%s7695_s5 + $0x788] sm:$0xff]  ;;  %v5558_v43 = vld [vmem:[%s7695_s5 + $0x310] sm:$0xff] }
  0x57   :  { %6042 = vmatprep.subr.bf16.mxu1 %v6041_v28  ;;  %v5732_v28 = vld [vmem:[%s7695_s5 + $0x880] sm:$0xff]  ;;  %v5737_v22 = vld [vmem:[%s7695_s5 + $0x8a8] sm:$0xff] }
  0x58   :  { %6072 = vmatpush1.bf16.msra.mxu0 %v6071_v31  ;;  %v5804_v31 = vld [vmem:[%s7695_s5 + $0xac0] sm:$0xff]  ;;  %v6111_v36 = vpack.c.bf16 %v5732_v28, %v5696_v27  ;;  %v5518_v27 = vld [vmem:[%s7695_s5 + $0x1d0] sm:$0xff]  ;;  %v5555_v28 = vld [vmem:[%s7695_s5 + $0x2f8] sm:$0xff] }
  0x59   :  { %6074 = vmatprep.subr.bf16.mxu0 %v6073_v34  ;;  %v5550_v34 = vld [vmem:[%s7695_s5 + $0x2d0] sm:$0xff]  ;;  %v3469_v41 = vsel %vm3268_vm0, %v5804_v31, %v6339_v0  ;;  %v6149_v31 = vpack.c.bf16 %v5737_v22, %v5701_v21 }
  0x5a   :  { %6044 = vmatpush1.bf16.msra.mxu1 %v6043_v39  ;;  %v6113_v39 = vpack.c.bf16 %v3479_v30, %v5769_v29  ;;  %v5591_v30 = vld [vmem:[%s7695_s5 + $0x418] sm:$0xff] }
  0x5b   :  { %6046 = vmatprep.subr.bf16.mxu1 %v6045_v40  ;;  %v5768_v40 = vld [vmem:[%s7695_s5 + $0x9a0] sm:$0xff]  ;;  %v6121_v38 = vpack.c.bf16 %v5591_v30, %v5555_v28  ;;  %v5813_v28 = vld [vmem:[%s7695_s5 + $0xb08] sm:$0xff]  ;;  %v5486_v30 = vld [vmem:[%s7695_s5 + $0xd0] sm:$0xff] }
  0x5c   :  { %6076 = vmatpush1.bf16.msra.mxu0 %v6075_v44  ;;  %v6083_v44 = vpack.c.bf16 %v5586_v35, %v5550_v34  ;;  %v6115_v49 = vpack.c.bf16 %v3469_v41, %v5768_v40  ;;  %v5773_v34 = vld [vmem:[%s7695_s5 + $0x9c8] sm:$0xff]  ;;  %v5590_v40 = vld [vmem:[%s7695_s5 + $0x410] sm:$0xff] }
  0x5d   :  { %6098 = vmatprep.subr.bf16.mxu0 %v6097_v46  ;;  %v5622_v46 = vld [vmem:[%s7695_s5 + $0x510] sm:$0xff] }
  0x5e   :  { %6048 = vmatpush1.bf16.msra.mxu1 %v6047_v52  ;;  %v5484_v52 = vld [vmem:[%s7695_s5 + $0xc0] sm:$0xff] }
  0x5f   :  { %5828 = vmatmul.mubr.msk.f32.vlgmr.msra.gmra.mrb[6].mxu0 %vm3984_vm1, %v6490_v6  ;;  %6050 = vmatprep.subr.bf16.mxu1 %v6049_v53  ;;  %v5520_v53 = vld [vmem:[%s7695_s5 + $0x1e0] sm:$0xff] }
  0x60   :  { %6100 = vmatpush1.bf16.msra.mxu0 %v6099_v57  ;;  %4762 = vmatprep.mubr.f32.mxu0 %v6294_v9  ;;  %v6087_v57 = vpack.c.bf16 %v5658_v47, %v5622_v46  ;;  %v6139_v62 = vpack.c.bf16 %v5520_v53, %v5484_v52  ;;  %v5489_v47 = vld [vmem:[%s7695_s5 + $0xe8] sm:$0xff]  ;;  %v5662_v52 = vld [vmem:[%s7695_s5 + $0x650] sm:$0xff]  ;;  %v5699_v53 = vld [vmem:[%s7695_s5 + $0x778] sm:$0xff] }
  0x61   :  { %6102 = vmatprep.subr.bf16.mxu0 %v6101_v60  ;;  %v5730_v60 = vld [vmem:[%s7695_s5 + $0x870] sm:$0xff] }
  0x62   :  { %6052 = vmatpush1.bf16.msra.mxu1 %v6051_v2  ;;  %v6141_v2 = vpack.c.bf16 %v5593_v56, %v5557_v55  ;;  %v5735_v55 = vld [vmem:[%s7695_s5 + $0x898] sm:$0xff]  ;;  %v6177_v56 = vpack.c.bf16 %v5525_v48, %v5489_v47 }
  0x63   :  { %6054 = vmatprep.subr.bf16.mxu1 %v6053_v3  ;;  %v5556_v3 = vld [vmem:[%s7695_s5 + $0x300] sm:$0xff]  ;;  %v6129_v63 = vpack.c.bf16 %v5735_v55, %v5699_v53  ;;  %v5667_v47 = vld [vmem:[%s7695_s5 + $0x678] sm:$0xff]  ;;  %v5529_v53 = vld [vmem:[%s7695_s5 + $0x228] sm:$0xff] }
  0x64   :  { %6104 = vmatpush1.bf16.msra.mxu0 %v6103_v8  ;;  %v6091_v8 = vpack.c.bf16 %v5730_v60, %v5694_v59  ;;  %v6143_v14 = vpack.c.bf16 %v5592_v4, %v5556_v3  ;;  %v5807_v59 = vld [vmem:[%s7695_s5 + $0xad8] sm:$0xff]  ;;  %v5561_v60 = vld [vmem:[%s7695_s5 + $0x328] sm:$0xff] }
  0x65   :  { %6106 = vmatprep.subr.bf16.mxu0 %v6105_v11  ;;  %v5766_v11 = vld [vmem:[%s7695_s5 + $0x990] sm:$0xff]  ;;  %v5771_v3 = vld [vmem:[%s7695_s5 + $0x9b8] sm:$0xff] }
  0x66   :  { %6056 = vmatpush1.bf16.msra.mxu1 %v6055_v17  ;;  %v6145_v17 = vpack.c.bf16 %v5665_v7, %v5629_v5  ;;  %v6095_v23 = vpack.c.bf16 %v3449_v12, %v5766_v11  ;;  %v3499_v5 = vsel %vm3268_vm0, %v5807_v59, %v6339_v0  ;;  %v5806_v7 = vld [vmem:[%s7695_s5 + $0xad0] sm:$0xff]  ;;  %v5596_v11 = vld [vmem:[%s7695_s5 + $0x440] sm:$0xff]  ;;  %v5633_v12 = vld [vmem:[%s7695_s5 + $0x568] sm:$0xff] }
  0x67   :  { %6078 = vmatprep.subr.bf16.mxu1 %v6077_v20  ;;  %v5664_v20 = vld [vmem:[%s7695_s5 + $0x660] sm:$0xff]  ;;  %v6133_v16 = vpack.c.bf16 %v3499_v5, %v5771_v3  ;;  %v6185_v22 = vpack.c.bf16 %v5669_v13, %v5633_v12  ;;  %v5601_v3 = vld [vmem:[%s7695_s5 + $0x468] sm:$0xff]  ;;  %v5810_v13 = vld [vmem:[%s7695_s5 + $0xaf0] sm:$0xff] }
  0x68   :  { %6108 = vmatpush1.bf16.msra.mxu0 %v6107_v24  ;;  %v5809_v24 = vld [vmem:[%s7695_s5 + $0xae8] sm:$0xff]  ;;  %v6147_v29 = vpack.c.bf16 %v5664_v20, %v5628_v19  ;;  %v3489_v19 = vsel %vm3268_vm0, %v5806_v7, %v6339_v0  ;;  %v5487_v20 = vld [vmem:[%s7695_s5 + $0xd8] sm:$0xff]  ;;  %v5702_v7 = vld [vmem:[%s7695_s5 + $0x790] sm:$0xff] }
  0x69   :  { %6110 = vmatprep.subr.bf16.mxu0 %v6109_v26  ;;  %5827 = vmatmul.mubr.msk.f32.vlgmr.msra.gmra.mrb[8].mxu1 %vm3984_vm1, %v6490_v6  ;;  %v5482_v26 = vld [vmem:[%s7695_s5 + $0xb0] sm:$0xff]  ;;  %v3519_v35 = vsel %vm3268_vm0, %v5809_v24, %v6339_v0  ;;  %v5668_v24 = vld [vmem:[%s7695_s5 + $0x680] sm:$0xff] }
  0x6a   :  { %6080 = vmatpush1.bf16.msra.mxu1 %v6079_v32  ;;  %4691 = vmatprep.mubr.f32.mxu1 %v6294_v9  ;;  %v5700_v32 = vld [vmem:[%s7695_s5 + $0x780] sm:$0xff]  ;;  %v6119_v37 = vpack.c.bf16 %v5518_v27, %v5482_v26  ;;  %v5741_v26 = vld [vmem:[%s7695_s5 + $0x8c8] sm:$0xff] }
  0x6b   :  { %6082 = vmatprep.subr.bf16.mxu1 %v6081_v33  ;;  %v5736_v33 = vld [vmem:[%s7695_s5 + $0x8a0] sm:$0xff] }
  0x6c   :  { %6112 = vmatpush1.bf16.msra.mxu0 %v6111_v36  ;;  %v5808_v36 = vld [vmem:[%s7695_s5 + $0xae0] sm:$0xff]  ;;  %v6151_v41 = vpack.c.bf16 %v5736_v33, %v5700_v32  ;;  %v5559_v32 = vld [vmem:[%s7695_s5 + $0x318] sm:$0xff] }
  0x6d   :  { %6114 = vmatprep.subr.bf16.mxu0 %v6113_v39  ;;  %v5554_v39 = vld [vmem:[%s7695_s5 + $0x2f0] sm:$0xff]  ;;  %v3509_v46 = vsel %vm3268_vm0, %v5808_v36, %v6339_v0  ;;  %v5704_v36 = vld [vmem:[%s7695_s5 + $0x7a0] sm:$0xff] }
  0x6e   :  { %6084 = vmatpush1.bf16.msra.mxu1 %v6083_v44  ;;  %v6153_v44 = vpack.c.bf16 %v3519_v35, %v5773_v34  ;;  %v5595_v34 = vld [vmem:[%s7695_s5 + $0x438] sm:$0xff] }
  0x6f   :  { %6086 = vmatprep.subr.bf16.mxu1 %v6085_v45  ;;  %v5772_v45 = vld [vmem:[%s7695_s5 + $0x9c0] sm:$0xff]  ;;  %v6161_v42 = vpack.c.bf16 %v5595_v34, %v5559_v32  ;;  %v5745_v32 = vld [vmem:[%s7695_s5 + $0x8e8] sm:$0xff] }
  0x70   :  { %6116 = vmatpush1.bf16.msra.mxu0 %v6115_v49  ;;  %v6123_v49 = vpack.c.bf16 %v5590_v40, %v5554_v39  ;;  %v6155_v54 = vpack.c.bf16 %v3509_v46, %v5772_v45  ;;  %v3559_v39 = vsel %vm3268_vm0, %v5813_v28, %v6339_v0  ;;  %v5812_v40 = vld [vmem:[%s7695_s5 + $0xb00] sm:$0xff]  ;;  %v5631_v46 = vld [vmem:[%s7695_s5 + $0x558] sm:$0xff] }
  0x71   :  { %6138 = vmatprep.subr.bf16.mxu0 %v6137_v51  ;;  %v5626_v51 = vld [vmem:[%s7695_s5 + $0x530] sm:$0xff]  ;;  %v6165_v55 = vpack.c.bf16 %v5667_v47, %v5631_v46  ;;  %v5781_v46 = vld [vmem:[%s7695_s5 + $0xa08] sm:$0xff] }
  0x72   :  { %6088 = vmatpush1.bf16.msra.mxu1 %v6087_v57  ;;  %v5488_v57 = vld [vmem:[%s7695_s5 + $0xe0] sm:$0xff] }
  0x73   :  { %5830 = vmatmul.mubr.msk.f32.vlgmr.msra.gmra.mrb[8].mxu0 %vm3984_vm1, %v6490_v6  ;;  %6090 = vmatprep.subr.bf16.mxu1 %v6089_v58  ;;  %v5524_v58 = vld [vmem:[%s7695_s5 + $0x200] sm:$0xff] }
  0x74   :  { %6140 = vmatpush1.bf16.msra.mxu0 %v6139_v62  ;;  %4904 = vmatprep.mubr.f32.mxu0 %v6294_v9  ;;  %v6127_v62 = vpack.c.bf16 %v5662_v52, %v5626_v51  ;;  %v6179_v4 = vpack.c.bf16 %v5524_v58, %v5488_v57  ;;  %v7347_v51 = vld [vmem:[%s7690_s0] sm:$0xf]  ;;  %v5493_v52 = vld [vmem:[%s7695_s5 + $0x108] sm:$0xff]  ;;  %v5666_v57 = vld [vmem:[%s7695_s5 + $0x670] sm:$0xff] }
  0x75   :  { %6142 = vmatprep.subr.bf16.mxu0 %v6141_v2  ;;  %v5734_v2 = vld [vmem:[%s7695_s5 + $0x890] sm:$0xff]  ;;  %v5703_v58 = vld [vmem:[%s7695_s5 + $0x798] sm:$0xff] }
  0x76   :  { %6092 = vmatpush1.bf16.msra.mxu1 %v6091_v8  ;;  %v6181_v8 = vpack.c.bf16 %v5597_v61, %v5561_v60  ;;  %v5739_v60 = vld [vmem:[%s7695_s5 + $0x8b8] sm:$0xff]  ;;  %v6217_v61 = vpack.c.bf16 %v5529_v53, %v5493_v52  ;;  %v5562_v52 = vld [vmem:[%s7695_s5 + $0x330] sm:$0xff] }
  0x77   :  { %6094 = vmatprep.subr.bf16.mxu1 %v6093_v10  ;;  %v5560_v10 = vld [vmem:[%s7695_s5 + $0x320] sm:$0xff]  ;;  %v6169_v5 = vpack.c.bf16 %v5739_v60, %v5703_v58  ;;  %v5598_v53 = vld [vmem:[%s7695_s5 + $0x450] sm:$0xff] }
  0x78   :  { %6144 = vmatpush1.bf16.msra.mxu0 %v6143_v14  ;;  %v6131_v14 = vpack.c.bf16 %v5734_v2, %v5698_v1  ;;  %v6183_v21 = vpack.c.bf16 %v5596_v11, %v5560_v10  ;;  %v5811_v1 = vld [vmem:[%s7695_s5 + $0xaf8] sm:$0xff]  ;;  %v5565_v2 = vld [vmem:[%s7695_s5 + $0x348] sm:$0xff]  ;;  %v5780_v58 = vld [vmem:[%s7695_s5 + $0xa00] sm:$0xff]  ;;  %v6203_v60 = vpack.c.bf16 %v5598_v53, %v5562_v52 }
  0x79   :  { %6146 = vmatprep.subr.bf16.mxu0 %v6145_v17  ;;  %v5770_v17 = vld [vmem:[%s7695_s5 + $0x9b0] sm:$0xff]  ;;  %v5775_v10 = vld [vmem:[%s7695_s5 + $0x9d8] sm:$0xff]  ;;  %v3539_v12 = vsel %vm3268_vm0, %v5811_v1, %v6339_v0 }
  0x7a   :  { %6096 = vmatpush1.bf16.msra.mxu1 %v6095_v23  ;;  %v5632_v23 = vld [vmem:[%s7695_s5 + $0x560] sm:$0xff]  ;;  %v6135_v27 = vpack.c.bf16 %v3489_v19, %v5770_v17  ;;  %v5637_v19 = vld [vmem:[%s7695_s5 + $0x588] sm:$0xff] }
  0x7b   :  { %6118 = vmatprep.subr.bf16.mxu1 %v6117_v25  ;;  %v5705_v25 = vld [vmem:[%s7695_s5 + $0x7a8] sm:$0xff]  ;;  %v6187_v33 = vpack.c.bf16 %v5668_v24, %v5632_v23  ;;  %v5600_v17 = vld [vmem:[%s7695_s5 + $0x460] sm:$0xff]  ;;  %v3529_v23 = vsel %vm3268_vm0, %v5810_v13, %v6339_v0  ;;  %v5491_v24 = vld [vmem:[%s7695_s5 + $0xf8] sm:$0xff] }
  0x7c   :  { %6148 = vmatpush1.bf16.msra.mxu0 %v6147_v29  ;;  %v6189_v35 = vpack.c.bf16 %v5741_v26, %v5705_v25  ;;  %v5301_v26 = vld [vmem:[%s7691_s1] sm:$0xf]  ;;  %v5814_v13 = vld [vmem:[%s7695_s5 + $0xb10] sm:$0xff] }
  0x7d   :  { %6150 = vmatprep.subr.bf16.mxu0 %v6149_v31  ;;  %5829 = vmatmul.mubr.msk.f32.vlgmr.msra.gmra.mrb[10].mxu1 %vm3984_vm1, %v6490_v6  ;;  %v5522_v31 = vld [vmem:[%s7695_s5 + $0x1f0] sm:$0xff] }
  0x7e   :  { %6120 = vmatpush1.bf16.msra.mxu1 %v6119_v37  ;;  %4833 = vmatprep.mubr.f32.mxu1 %v6294_v9  ;;  %v5740_v37 = vld [vmem:[%s7695_s5 + $0x8c0] sm:$0xff] }
  0x7f   :  { %6122 = vmatprep.subr.bf16.mxu1 %v6121_v38  ;;  %v5777_v38 = vld [vmem:[%s7695_s5 + $0x9e8] sm:$0xff]  ;;  %v6191_v45 = vpack.c.bf16 %v5740_v37, %v5704_v36 }
  0x80   :  { %6152 = vmatpush1.bf16.msra.mxu0 %v6151_v41  ;;  %v6159_v41 = vpack.c.bf16 %v5522_v31, %v5486_v30  ;;  %v6193_v48 = vpack.c.bf16 %v3559_v39, %v5777_v38  ;;  %v5672_v30 = vld [vmem:[%s7695_s5 + $0x6a0] sm:$0xff]  ;;  %v5709_v31 = vld [vmem:[%s7695_s5 + $0x7c8] sm:$0xff]  ;;  %v5526_v38 = vld [vmem:[%s7695_s5 + $0x210] sm:$0xff] }
  0x81   :  { %6154 = vmatprep.subr.bf16.mxu0 %v6153_v44  ;;  %v5594_v44 = vld [vmem:[%s7695_s5 + $0x430] sm:$0xff]  ;;  %v5817_v36 = vld [vmem:[%s7695_s5 + $0xb28] sm:$0xff]  ;;  %v5563_v39 = vld [vmem:[%s7695_s5 + $0x338] sm:$0xff] }
  0x82   :  { %6124 = vmatpush1.bf16.msra.mxu1 %v6123_v49  ;;  %v5776_v49 = vld [vmem:[%s7695_s5 + $0x9e0] sm:$0xff]  ;;  %v3599_v47 = vsel %vm3268_vm0, %v5817_v36, %v6339_v0  ;;  %v5674_v36 = vld [vmem:[%s7695_s5 + $0x6b0] sm:$0xff] }
  0x83   :  { %6126 = vmatprep.subr.bf16.mxu1 %v6125_v50  ;;  %v3549_v50 = vsel %vm3268_vm0, %v5812_v40, %v6339_v0 }
  0x84   :  { %6156 = vmatpush1.bf16.msra.mxu0 %v6155_v54  ;;  %v6163_v54 = vpack.c.bf16 %v5594_v44, %v5558_v43  ;;  %v6195_v59 = vpack.c.bf16 %v3549_v50, %v5776_v49  ;;  %v6229_v43 = vpack.c.bf16 %v5745_v32, %v5709_v31  ;;  %v5708_v44 = vld [vmem:[%s7695_s5 + $0x7c0] sm:$0xff]  ;;  %v5639_v31 = vld [vmem:[%s7695_s5 + $0x598] sm:$0xff] }
  0x85   :  { %6178 = vmatprep.subr.bf16.mxu0 %v6177_v56  ;;  %v5630_v56 = vld [vmem:[%s7695_s5 + $0x550] sm:$0xff]  ;;  %v5675_v32 = vld [vmem:[%s7695_s5 + $0x6b8] sm:$0xff] }
  0x86   :  { %6128 = vmatpush1.bf16.msra.mxu1 %v6127_v62  ;;  %v5492_v62 = vld [vmem:[%s7695_s5 + $0x100] sm:$0xff] }
  0x87   :  { %5832 = vmatmul.mubr.msk.f32.vlgmr.msra.gmra.mrb[10].mxu0 %vm3984_vm1, %v6490_v6  ;;  %6130 = vmatprep.subr.bf16.mxu1 %v6129_v63  ;;  %v5523_v6 = vld [vmem:[%s7695_s5 + $0x1f8] sm:$0xff]  ;;  %v5528_v63 = vld [vmem:[%s7695_s5 + $0x220] sm:$0xff] }
  0x88   :  { %6180 = vmatpush1.bf16.msra.mxu0 %v6179_v4  ;;  %5046 = vmatprep.mubr.f32.mxu0 %v6294_v9  ;;  %v6157_v29 = vpack.c.bf16 %v5523_v6, %v5487_v20  ;;  %v6167_v4 = vpack.c.bf16 %v5666_v57, %v5630_v56  ;;  %v6219_v11 = vpack.c.bf16 %v5528_v63, %v5492_v62  ;;  %v5673_v20 = vld [vmem:[%s7695_s5 + $0x6a8] sm:$0xff]  ;;  %v5671_v56 = vld [vmem:[%s7695_s5 + $0x698] sm:$0xff]  ;;  %v5634_v62 = vld [vmem:[%s7695_s5 + $0x570] sm:$0xff] }
  0x89   :  { %6182 = vmatprep.subr.bf16.mxu0 %v6181_v8  ;;  %v5738_v8 = vld [vmem:[%s7695_s5 + $0x8b0] sm:$0xff]  ;;  %v6173_v6 = vpack.c.bf16 %v3539_v12, %v5775_v10  ;;  %v6225_v28 = vpack.c.bf16 %v5673_v20, %v5637_v19  ;;  %v6233_v57 = vpack.c.bf16 %v3599_v47, %v5781_v46  ;;  %v3569_v19 = vsel %vm3268_vm0, %v5814_v13, %v6339_v0  ;;  %v5495_v20 = vld [vmem:[%s7695_s5 + $0x118] sm:$0xff] }
  0x8a   :  { %6132 = vmatpush1.bf16.msra.mxu1 %v6131_v14  ;;  %v6221_v14 = vpack.c.bf16 %v5601_v3, %v5565_v2  ;;  %v5670_v63 = vld [vmem:[%s7695_s5 + $0x690] sm:$0xff]  ;;  %v5707_v2 = vld [vmem:[%s7695_s5 + $0x7b8] sm:$0xff] }
  0x8b   :  { %6134 = vmatprep.subr.bf16.mxu1 %v6133_v16  ;;  %v5564_v16 = vld [vmem:[%s7695_s5 + $0x340] sm:$0xff]  ;;  %v5743_v3 = vld [vmem:[%s7695_s5 + $0x8d8] sm:$0xff]  ;;  %v5742_v10 = vld [vmem:[%s7695_s5 + $0x8d0] sm:$0xff] }
  0x8c   :  { %6184 = vmatpush1.bf16.msra.mxu0 %v6183_v21  ;;  %v6171_v21 = vpack.c.bf16 %v5738_v8, %v5702_v7  ;;  %v6223_v25 = vpack.c.bf16 %v5600_v17, %v5564_v16  ;;  %v6209_v7 = vpack.c.bf16 %v5743_v3, %v5707_v2  ;;  %v5706_v8 = vld [vmem:[%s7695_s5 + $0x7b0] sm:$0xff]  ;;  %v5353_v3 = vld [vmem:[%s7693_s3 + $0x18] sm:$0xff] }
  0x8d   :  { %6186 = vmatprep.subr.bf16.mxu0 %v6185_v22  ;;  %v5774_v22 = vld [vmem:[%s7695_s5 + $0x9d0] sm:$0xff] }
  0x8e   :  { %6136 = vmatpush1.bf16.msra.mxu1 %v6135_v27  ;;  %v5527_v27 = vld [vmem:[%s7695_s5 + $0x218] sm:$0xff]  ;;  %v6175_v34 = vpack.c.bf16 %v3529_v23, %v5774_v22  ;;  %v5778_v17 = vld [vmem:[%s7695_s5 + $0x9f0] sm:$0xff] }
  0x8f   :  { %6158 = vmatprep.subr.bf16.mxu1 %v6157_v29  ;;  %v5636_v29 = vld [vmem:[%s7695_s5 + $0x580] sm:$0xff]  ;;  %v6197_v37 = vpack.c.bf16 %v5527_v27, %v5491_v24  ;;  %v5494_v23 = vld [vmem:[%s7695_s5 + $0x110] sm:$0xff] }
  0x90   :  { %6188 = vmatpush1.bf16.msra.mxu0 %v6187_v33  ;;  %v6295_v33 = vmov 0   ;;  %v6227_v40 = vpack.c.bf16 %v5672_v30, %v5636_v29  ;;  %v5530_v24 = vld [vmem:[%s7695_s5 + $0x230] sm:$0xff] }
  0x91   :  { %6190 = vmatprep.subr.bf16.mxu0 %v6189_v35  ;;  %5831 = vmatmul.mubr.msk.f32.vlgmr.msra.gmra.mrb[12].mxu1 %vm3984_vm1, %v7347_v51  ;;  %v5490_v35 = vld [vmem:[%s7695_s5 + $0xf0] sm:$0xff]  ;;  %v6239_v27 = vpack.c.bf16 %v5530_v24, %v5494_v23  ;;  %v5359_v23 = vld [vmem:[%s7693_s3 + $0x48] sm:$0xff] }
  0x92   :  { %6160 = vmatpush1.bf16.msra.mxu1 %v6159_v41  ;;  %4975 = vmatprep.mubr.f32.mxu1 %v6294_v9  ;;  %v5366_v41 = vld [vmem:[%s7694_s4] sm:$0xff]  ;;  %v6199_v49 = vpack.c.bf16 %v5526_v38, %v5490_v35  ;;  %v5566_v29 = vld [vmem:[%s7695_s5 + $0x350] sm:$0xff]  ;;  %v5747_v38 = vld [vmem:[%s7695_s5 + $0x8f8] sm:$0xff] }
  0x93   :  { %6162 = vmatprep.subr.bf16.mxu1 %v6161_v42  ;;  %6291 = vset.pattern.permute.xlu0 %v6295_v33  ;;  %v5599_v42 = vld [vmem:[%s7695_s5 + $0x458] sm:$0xff]  ;;  %v5602_v30 = vld [vmem:[%s7695_s5 + $0x470] sm:$0xff] }
  0x94   :  { %6192 = vmatpush1.bf16.msra.mxu0 %v6191_v45  ;;  %6292 = vset.pattern.permute.xlu1 %v6295_v33  ;;  %v5744_v45 = vld [vmem:[%s7695_s5 + $0x8e0] sm:$0xff]  ;;  %v6201_v50 = vpack.c.bf16 %v5599_v42, %v5563_v39  ;;  %v6243_v33 = vpack.c.bf16 %v5602_v30, %v5566_v29  ;;  %v5638_v35 = vld [vmem:[%s7695_s5 + $0x590] sm:$0xff] }
  0x95   :  { %6194 = vmatprep.subr.bf16.mxu0 %v6193_v48  ;;  %5304 = vperm.xlu0 %6291, %v5301_v26   ;;  %v5816_v48 = vld [vmem:[%s7695_s5 + $0xb20] sm:$0xff]  ;;  %v5603_v26 = vld [vmem:[%s7695_s5 + $0x478] sm:$0xff]  ;;  %v6247_v39 = vpack.c.bf16 %v5674_v36, %v5638_v35  ;;  %v5746_v42 = vld [vmem:[%s7695_s5 + $0x8f0] sm:$0xff] }
  0x96   :  { %6164 = vmatpush1.bf16.msra.mxu1 %v6163_v54  ;;  %v6231_v54 = vpack.c.bf16 %v5744_v45, %v5708_v44  ;;  %v5818_v45 = vld [vmem:[%s7695_s5 + $0xb30] sm:$0xff]  ;;  %v5365_v36 = vld [vmem:[%s7693_s3 + $0x78] sm:$0xff] }
  0x97   :  { %6166 = vmatprep.subr.bf16.mxu1 %v6165_v55  ;;  %v5635_v55 = vld [vmem:[%s7695_s5 + $0x578] sm:$0xff]  ;;  %v5352_v2 = vld [vmem:[%s7693_s3 + $0x10] sm:$0xff] }
  0x98   :  { %6196 = vmatpush1.bf16.msra.mxu0 %v6195_v59  ;;  %v3589_v59 = vsel %vm3268_vm0, %v5816_v48, %v6339_v0  ;;  %v5782_v48 = vld [vmem:[%s7695_s5 + $0xa10] sm:$0xff] }
  0x99   :  { %6218 = vmatprep.subr.bf16.mxu0 %v6217_v61  ;;  %5370 = vperm.xlu0 %6291, %v5366_v41   ;;  %v6205_v61 = vpack.c.bf16 %v5671_v56, %v5635_v55  ;;  %v6235_v1 = vpack.c.bf16 %v3589_v59, %v5780_v58  ;;  %v5710_v41 = vld [vmem:[%s7695_s5 + $0x7d0] sm:$0xff] }
  0x9a   :  { %6168 = vmatpush1.bf16.msra.mxu1 %v6167_v4  ;;  %v5815_v4 = vld [vmem:[%s7695_s5 + $0xb18] sm:$0xff]  ;;  %v6251_v46 = vpack.c.bf16 %v5746_v42, %v5710_v41  ;;  %v5364_v35 = vld [vmem:[%s7693_s3 + $0x70] sm:$0xff]  ;;  %v5367_v41 = vld [vmem:[%s7694_s4 + $0x8] sm:$0x3] }
  0x9b   :  { %5834 = vmatmul.mubr.msk.f32.vlgmr.msra.gmra.mrb[12].mxu0 %vm3984_vm1, %v7347_v51  ;;  %6170 = vmatprep.subr.bf16.mxu1 %v6169_v5  ;;  %v6207_v5 = vpack.c.bf16 %v5670_v63, %v5634_v62  ;;  %v3579_v12 = vsel %vm3268_vm0, %v5815_v4, %v6339_v0  ;;  %v5350_v63 = vld [vmem:[%s7693_s3] sm:$0xff] }
  0x9c   :  { %6220 = vmatpush1.bf16.msra.mxu0 %v6219_v11  ;;  %5188 = vmatprep.mubr.f32.mxu0 %v6294_v9  ;;  %v5779_v11 = vld [vmem:[%s7695_s5 + $0x9f8] sm:$0xff]  ;;  %v5354_v4 = vld [vmem:[%s7693_s3 + $0x20] sm:$0xff] }
  0x9d   :  { %6222 = vmatprep.subr.bf16.mxu0 %v6221_v14  ;;  %v6211_v14 = vpack.c.bf16 %v5742_v10, %v5706_v8  ;;  %v6213_v16 = vpack.c.bf16 %v3579_v12, %v5779_v11  ;;  %v5355_v8 = vld [vmem:[%s7693_s3 + $0x28] sm:$0xff]  ;;  %5375 = vperm.xlu1 %6292, %v5367_v41   ;;  %v5842_v41 = vld [vmem:[%s7692_s2 + $0x30] sm:$0xff] }
  0x9e   :  { %6172 = vmatpush1.bf16.msra.mxu1 %v6171_v21  ;;  %v5531_v21 = vld [vmem:[%s7695_s5 + $0x238] sm:$0xff]  ;;  %v6265_v12 = vpack.c.bf16 %v5355_v8, %v5354_v4 }
  0x9f   :  { %6174 = vmatprep.subr.bf16.mxu1 %v6173_v6  ;;  %v6215_v6 = vpack.c.bf16 %v3569_v19, %v5778_v17  ;;  %v6237_v22 = vpack.c.bf16 %v5531_v21, %v5495_v20  ;;  %v5356_v19 = vld [vmem:[%s7693_s3 + $0x30] sm:$0xff]  ;;  %v5357_v20 = vld [vmem:[%s7693_s3 + $0x38] sm:$0xff] }
  0xa0   :  { %6224 = vmatpush1.bf16.msra.mxu0 %v6223_v25  ;;  %v5567_v25 = vld [vmem:[%s7695_s5 + $0x358] sm:$0xff] }
  0xa1   :  { %6226 = vmatprep.subr.bf16.mxu0 %v6225_v28  ;;  %v6241_v28 = vpack.c.bf16 %v5603_v26, %v5567_v25  ;;  %v5360_v25 = vld [vmem:[%s7693_s3 + $0x50] sm:$0xff]  ;;  %v5361_v26 = vld [vmem:[%s7693_s3 + $0x58] sm:$0xff] }
  0xa2   :  { %6176 = vmatpush1.bf16.msra.mxu1 %v6175_v34  ;;  %v6245_v34 = vpack.c.bf16 %v5675_v32, %v5639_v31  ;;  %v5362_v31 = vld [vmem:[%s7693_s3 + $0x60] sm:$0xff]  ;;  %v5363_v32 = vld [vmem:[%s7693_s3 + $0x68] sm:$0xff] }
  0xa3   :  { %6198 = vmatprep.subr.bf16.mxu1 %v6197_v37  ;;  %v5711_v37 = vld [vmem:[%s7695_s5 + $0x7d8] sm:$0xff] }
  0xa4   :  { %6228 = vmatpush1.bf16.msra.mxu0 %v6227_v40  ;;  %v6249_v40 = vpack.c.bf16 %v5747_v38, %v5711_v37  ;;  %v6285_v37 = vpack.c.bf16 %v5365_v36, %v5364_v35  ;;  %v5840_v35 = vld [vmem:[%s7692_s2 + $0x20] sm:$0xff] }
  0xa5   :  { %6230 = vmatprep.subr.bf16.mxu0 %v6229_v43  ;;  %5833 = vmatmul.mubr.msk.f32.vlgmr.msra.gmra.mrb[14].mxu1 %vm3984_vm1, %v7347_v51  ;;  %v5783_v43 = vld [vmem:[%s7695_s5 + $0xa18] sm:$0xff] }
  0xa6   :  { %6200 = vmatpush1.bf16.msra.mxu1 %v6199_v49  ;;  %5117 = vmatprep.mubr.f32.mxu1 %v6294_v9  ;;  %v3609_v49 = vsel %vm3268_vm0, %v5818_v45, %v6339_v0 }
  0xa7   :  { %6202 = vmatprep.subr.bf16.mxu1 %v6201_v50  ;;  %v6255_v50 = vpack.c.bf16 %v3609_v49, %v5782_v48 }
  0xa8   :  { %6232 = vmatpush1.bf16.msra.mxu0 %v6231_v54 }
  0xa9   :  { %6234 = vmatprep.subr.bf16.mxu0 %v6233_v57 }
  0xaa   :  { %6204 = vmatpush1.bf16.msra.mxu1 %v6203_v60 }
  0xab   :  { %6206 = vmatprep.subr.bf16.mxu1 %v6205_v61 }
  0xac   :  { %6236 = vmatpush1.bf16.msra.mxu0 %v6235_v1 }
  0xae   :  { %6208 = vmatpush1.bf16.msra.mxu1 %v6207_v5 }
  0xaf   :  { %5836 = vmatmul.mubr.msk.f32.vlgmr.msra.gmra.mrb[14].mxu0 %vm3984_vm1, %v7347_v51  ;;  %6210 = vmatprep.subr.bf16.mxu1 %v6209_v7  ;;  %v6261_v7 = vpack.c.bf16 %v5353_v3, %v5352_v2 }
  0xb2   :  { %6212 = vmatpush1.bf16.msra.mxu1 %v6211_v14 }
  0xb3   :  { %6214 = vmatprep.subr.bf16.mxu1 %v6213_v16 }
  0xb6   :  { %6216 = vmatpush1.bf16.msra.mxu1 %v6215_v6  ;;  %v6269_v6 = vpack.c.bf16 %v5357_v20, %v5356_v19 }
  0xb7   :  { %6238 = vmatprep.subr.bf16.mxu1 %v6237_v22  ;;  %v5358_v22 = vld [vmem:[%s7693_s3 + $0x40] sm:$0xff] }
  0xb8   :  { %v6273_v24 = vpack.c.bf16 %v5359_v23, %v5358_v22 }
  0xb9   :  { %5835 = vmatmul.mubr.msk.f32.vlgmr.msra.gmra.mrb[16].mxu1 %vm3984_vm1, %v7347_v51 }
  0xba   :  { %6240 = vmatpush1.bf16.msra.mxu1 %v6239_v27  ;;  %5259 = vmatprep.mubr.f32.mxu1 %v6294_v9  ;;  %v5819_v9 = vld [vmem:[%s7695_s5 + $0xb38] sm:$0xff]  ;;  %v6277_v27 = vpack.c.bf16 %v5361_v26, %v5360_v25  ;;  %v5322_v25 = vsub.s32 1, %v6370_v15  ;;  %v5333_v26 = vsub.s32 2, %v6370_v15 }
  0xbb   :  { %6242 = vmatprep.subr.bf16.mxu1 %v6241_v28  ;;  %v3619_v44 = vsel %vm3268_vm0, %v5819_v9, %v6339_v0 }
  0xbc   :  { %v6253_v47 = vpack.c.bf16 %v3619_v44, %v5783_v43 }
  0xbe   :  { %6244 = vmatpush1.bf16.msra.mxu1 %v6243_v33  ;;  %v6281_v33 = vpack.c.bf16 %v5363_v32, %v5362_v31  ;;  %v5309_v31 = vld [vmem:[%s7692_s2] sm:$0xff]  ;;  %v5838_v32 = vld [vmem:[%s7692_s2 + $0x10] sm:$0xff] }
  0xbf   :  { %6246 = vmatprep.subr.bf16.mxu1 %v6245_v34 }
  0xc2   :  { %6248 = vmatpush1.bf16.msra.mxu1 %v6247_v39 }
  0xc3   :  { %6250 = vmatprep.subr.bf16.mxu1 %v6249_v40 }
  0xc6   :  { %6252 = vmatpush1.bf16.msra.mxu1 %v6251_v46 }
  0xc7   :  { %6254 = vmatprep.subr.bf16.mxu1 %v6253_v47 }
  0xca   :  { %6256 = vmatpush1.bf16.msra.mxu1 %v6255_v50 }
  0xcd   :  { %5837 = vmatmul.mubr.msk.f32.vlgmr.msra.gmra.mrb[18].mxu1 %vm3984_vm1, %v7347_v51  ;;  %v5351_v51 = vld [vmem:[%s7693_s3 + $0x8] sm:$0xff] }
  0xce   :  { %v6257_v1 = vpack.c.bf16 %v5351_v51, %v5350_v63 }
  0xd0   :  { %6258 = vmatprep.subr.bf16.mxu0 %v6257_v1 }
  0xd1   :  { %6260 = vmatpush3.bf16.msra.mxu0 %v6257_v1 }
  0xd2   :  { %6262 = vmatprep.subr.bf16.mxu0 %v6261_v7 }
  0xd5   :  { %6264 = vmatpush3.bf16.msra.mxu0 %v6261_v7 }
  0xd6   :  { %6266 = vmatprep.subr.bf16.mxu0 %v6265_v12 }
  0xd9   :  { %6268 = vmatpush3.bf16.msra.mxu0 %v6265_v12 }
  0xda   :  { %6270 = vmatprep.subr.bf16.mxu0 %v6269_v6 }
  0xdd   :  { %6272 = vmatpush3.bf16.msra.mxu0 %v6269_v6 }
  0xde   :  { %6274 = vmatprep.subr.bf16.mxu0 %v6273_v24 }
  0xe1   :  { %6276 = vmatpush3.bf16.msra.mxu0 %v6273_v24  ;;  %v5313_v24 = vsub.s32 0, %v6370_v15 }
  0xe2   :  { %6278 = vmatprep.subr.bf16.mxu0 %v6277_v27 }
  0xe5   :  { %6280 = vmatpush3.bf16.msra.mxu0 %v6277_v27  ;;  %v5344_v27 = vsub.s32 3, %v6370_v15 }
  0xe6   :  { %6282 = vmatprep.subr.bf16.mxu0 %v6281_v33 }
  0xe9   :  { %6284 = vmatpush3.bf16.msra.mxu0 %v6281_v33 }
  0xea   :  { %6286 = vmatprep.subr.bf16.mxu0 %v6285_v37 }
  0xec   :  { %v4054_v52 = vpop.f32.mrb[0].mxu1 }
  0xed   :  { %v4056_v53 = vpop.f32.mrb[1].mxu1  ;;  %6288 = vmatpush3.bf16.msra.mxu0 %v6285_v37  ;;  %v5841_v37 = vld [vmem:[%s7692_s2 + $0x28] sm:$0x3] }
  0xee   :  { %v5266_v54 = vmax.f32 %v4054_v52, %v4056_v53 }
  0xf6   :  { %v4196_v55 = vpop.f32.mrb[0].mxu0 }
  0xf7   :  { %v4198_v56 = vpop.f32.mrb[1].mxu0 }
 0x100   :  { %v4125_v57 = vpop.f32.mrb[2].mxu1 }
 0x101   :  { %v5267_v58 = vmax.f32 %v5266_v54, %v4125_v57  ;;  %v4127_v59 = vpop.f32.mrb[3].mxu1 }
 0x103   :  { %v5268_v60 = vmax.f32 %v5267_v58, %v4127_v59 }
 0x105   :  { %v5269_v61 = vmax.f32 %v5268_v60, %v4196_v55 }
 0x107   :  { %v5270_v62 = vmax.f32 %v5269_v61, %v4198_v56 }
 0x10a   :  { %v4338_v18 = vpop.f32.mrb[2].mxu0 }
 0x10b   :  { %v4340_v0 = vpop.f32.mrb[3].mxu0 }
 0x114   :  { %v4267_v5 = vpop.f32.mrb[4].mxu1  ;;  %v5305_v22 = vpop.permute.xlu0 %5304 }
 0x115   :  { %v5271_v10 = vmax.f32 %v5270_v62, %v4267_v5  ;;  %v4269_v11 = vpop.f32.mrb[5].mxu1 }
 0x117   :  { %v5272_v13 = vmax.f32 %v5271_v10, %v4269_v11 }
 0x119   :  { %v5273_v14 = vmax.f32 %v5272_v13, %v4338_v18 }
 0x11b   :  { %v5274_v16 = vmax.f32 %v5273_v14, %v4340_v0 }
 0x11e   :  { %v4480_v17 = vpop.f32.mrb[4].mxu0 }
 0x11f   :  { %v4482_v21 = vpop.f32.mrb[5].mxu0 }
 0x128   :  { %v4409_v28 = vpop.f32.mrb[6].mxu1 }
 0x129   :  { %v5275_v29 = vmax.f32 %v5274_v16, %v4409_v28  ;;  %v4411_v30 = vpop.f32.mrb[7].mxu1 }
 0x12b   :  { %v5276_v34 = vmax.f32 %v5275_v29, %v4411_v30  ;;  %v5310_v29 = vld [vmem:[%s7692_s2 + $0x8] sm:$0x3]  ;;  %v5839_v30 = vld [vmem:[%s7692_s2 + $0x18] sm:$0x3] }
 0x12d   :  { %v5277_v38 = vmax.f32 %v5276_v34, %v4480_v17 }
 0x12f   :  { %v5278_v9 = vmax.f32 %v5277_v38, %v4482_v21 }
 0x132   :  { %v4622_v39 = vpop.f32.mrb[6].mxu0 }
 0x133   :  { %v4624_v40 = vpop.f32.mrb[7].mxu0 }
 0x13c   :  { %v4551_v42 = vpop.f32.mrb[8].mxu1 }
 0x13d   :  { %v5279_v43 = vmax.f32 %v5278_v9, %v4551_v42  ;;  %v4553_v44 = vpop.f32.mrb[9].mxu1  ;;  %v5843_v42 = vld [vmem:[%s7692_s2 + $0x38] sm:$0x3] }
 0x13f   :  { %v5280_v45 = vmax.f32 %v5279_v43, %v4553_v44 }
 0x141   :  { %v5281_v46 = vmax.f32 %v5280_v45, %v4622_v39 }
 0x143   :  { %v5282_v47 = vmax.f32 %v5281_v46, %v4624_v40 }
 0x146   :  { %v4764_v48 = vpop.f32.mrb[8].mxu0 }
 0x147   :  { %v4766_v49 = vpop.f32.mrb[9].mxu0 }
 0x150   :  { %v4693_v50 = vpop.f32.mrb[10].mxu1 }
 0x151   :  { %v5283_v52 = vmax.f32 %v5282_v47, %v4693_v50  ;;  %v4695_v53 = vpop.f32.mrb[11].mxu1 }
 0x153   :  { %v5284_v54 = vmax.f32 %v5283_v52, %v4695_v53 }
 0x155   :  { %v5285_v55 = vmax.f32 %v5284_v54, %v4764_v48  ;;  %v5376_v54 = vpop.permute.xlu1 %5375 }
 0x157   :  { %v5286_v56 = vmax.f32 %v5285_v55, %v4766_v49 }
 0x15a   :  { %v4906_v57 = vpop.f32.mrb[10].mxu0 }
 0x15b   :  { %v4908_v58 = vpop.f32.mrb[11].mxu0 }
 0x164   :  { %v4835_v59 = vpop.f32.mrb[12].mxu1 }
 0x165   :  { %v5287_v60 = vmax.f32 %v5286_v56, %v4835_v59  ;;  %v4837_v61 = vpop.f32.mrb[13].mxu1  ;;  %v5371_v56 = vpop.permute.xlu0 %5370 }
 0x167   :  { %v5288_v62 = vmax.f32 %v5287_v60, %v4837_v61 }
 0x169   :  { %v5289_v18 = vmax.f32 %v5288_v62, %v4906_v57 }
 0x16b   :  { %v5290_v0 = vmax.f32 %v5289_v18, %v4908_v58 }
 0x16e   :  { %v5048_v63 = vpop.f32.mrb[12].mxu0 }
 0x16f   :  { %v5050_v51 = vpop.f32.mrb[13].mxu0 }
 0x178   :  { %v4977_v1 = vpop.f32.mrb[14].mxu1 }
 0x179   :  { %v5291_v2 = vmax.f32 %v5290_v0, %v4977_v1  ;;  %v4979_v3 = vpop.f32.mrb[15].mxu1 }
 0x17b   :  { %v5292_v4 = vmax.f32 %v5291_v2, %v4979_v3 }
 0x17d   :  { %v5293_v5 = vmax.f32 %v5292_v4, %v5048_v63 }
 0x17f   :  { %v5294_v7 = vmax.f32 %v5293_v5, %v5050_v51 }
 0x182   :  { %v5190_v8 = vpop.f32.mrb[14].mxu0 }
 0x183   :  { %v5192_v10 = vpop.f32.mrb[15].mxu0 }
 0x18c   :  { %v5119_v11 = vpop.f32.mrb[16].mxu1 }
 0x18d   :  { %v5295_v12 = vmax.f32 %v5294_v7, %v5119_v11  ;;  %v5121_v13 = vpop.f32.mrb[17].mxu1 }
 0x18f   :  { %v5296_v14 = vmax.f32 %v5295_v12, %v5121_v13 }
 0x191   :  { %v5297_v16 = vmax.f32 %v5296_v14, %v5190_v8 }
 0x193   :  { %v5298_v17 = vmax.f32 %v5297_v16, %v5192_v10 }
 0x1a0   :  { %v5261_v19 = vpop.f32.mrb[18].mxu1 }
 0x1a1   :  { %v5299_v20 = vmax.f32 %v5298_v17, %v5261_v19  ;;  %v5263_v21 = vpop.f32.mrb[19].mxu1 }
 0x1a3   :  { %v5300_v6 = vmax.f32 %v5299_v20, %v5263_v21 }
 0x1a5   :  { %v5307_v23 = vadd.f32 %v5305_v22, %v5300_v6 }
 0x1a7   :  { %v5308_v28 = vmax.f32 %v5307_v23, 0.0 }
 0x1a9   :  { %v5314_v33 = vrot.slane %v5308_v28, %v5313_v24  ;;  %v5323_v34 = vrot.slane %v5308_v28, %v5322_v25  ;;  %v5334_v15 = vrot.slane %v5308_v28, %v5333_v26  ;;  %v5345_v36 = vrot.slane %v5308_v28, %v5344_v27 }
 0x1ab   :  { %v5316_v38 = vmul.f32 %v5314_v33, %v5310_v29  ;;  %v5325_v9 = vmul.f32 %v5839_v30, %v5323_v34  ;;  %v5315_v39 = vmul.f32 %v5314_v33, %v5309_v31  ;;  %v5324_v40 = vmul.f32 %v5838_v32, %v5323_v34 }
 0x1ac   :  { %v5335_v44 = vmul.f32 %v5840_v35, %v5334_v15  ;;  %v5336_v46 = vmul.f32 %v5841_v37, %v5334_v15  ;;  %v5346_v48 = vmul.f32 %v5842_v41, %v5345_v36  ;;  %v5347_v50 = vmul.f32 %v5843_v42, %v5345_v36 }
 0x1ad   :  { %v5326_v43 = vadd.f32 %v5324_v40, %v5315_v39  ;;  %v5327_v45 = vadd.f32 %v5325_v9, %v5316_v38 }
 0x1af   :  { %v5337_v47 = vadd.f32 %v5335_v44, %v5326_v43  ;;  %v5338_v49 = vadd.f32 %v5336_v46, %v5327_v45 }
 0x1b1   :  { %v5348_v52 = vadd.f32 %v5346_v48, %v5337_v47  ;;  %v5349_v53 = vadd.f32 %v5347_v50, %v5338_v49 }
 0x1b3   :  { %5894 = vmatprep.mubr.f32.mxu0 %v5348_v52 }
 0x1b4   :  { %5895 = vmatmul.mubr.f32.vlgmr.msra.gmra.mrb[16].mxu0 %v5349_v53 }
 0x287   :  { %v5896_v55 = vpop.f32.mrb[16].mxu0 }
 0x288   :  { %v5450_v57 = vadd.f32 %v5896_v55, %v5376_v54  ;;  %v5444_v58 = vpop.f32.mrb[17].mxu0 }
 0x289   :  { %v5445_v59 = vadd.f32 %v5444_v58, %v5371_v56 }
 0x28a   :  { %5456 = vst.msk [vmem:[%s7697_s7 + $0x8] sm:$0x3] %vm5455_vm2, %v5450_v57 }
 0x28b   :  { %5454 = vst.msk [vmem:[%s7697_s7] sm:$0xff] %vm5453_vm3, %v5445_v59 }

</bundles_post_ra>
